<compile_context>
chip_gen: v7x
topology: tpu7x:2x2x1
jax: 0.10.0
libtpu: 0.0.40
codegen_flags: <defaults>
</compile_context>

<pallas_src>
import functools

import numpy as np
import jax
import jax.numpy as jnp
from jax.experimental import pallas as pl
from jax.experimental.pallas import tpu as pltpu

# ---------------- model constants -------------------------------------------
SAMPLE_RATE = 16000
N_FFT = 64
HOP_SIZE = 16
F_MIN = 30.0
F_MAX = 8000.0
N_MELS = 32
CNN_UNIT = 8                     # conv channels: CNN_UNIT, CNN_UNIT, 2*CNN_UNIT
FC_UNIT = 64
N_KEYS = 88
BN_EPS = 1e-5

COMPUTE_DTYPE = jnp.bfloat16     # MXU inputs (f32 accumulation everywhere)

C1_K = 3 * N_MELS                         # 96   conv1 packed K (3 time taps)
C1_N = N_MELS * CNN_UNIT                  # 256  conv1 packed lanes per stack
C2_K = 3 * N_MELS * CNN_UNIT              # 768  conv2 packed K
C2_N = (N_MELS // 2) * CNN_UNIT           # 128  conv2 pooled lanes (per half)
C3_K = 3 * (N_MELS // 2) * CNN_UNIT       # 384  conv3 packed K
C3_N = (N_MELS // 4) * (2 * CNN_UNIT)     # 128  conv3 pooled lanes (per half)
FC_IN = C3_N                              # 128
HEAD_N = 128                              # head padded to 128 lanes (real 88)
MAX_TT = 512                              # time-tile cap (multiple of 8)


# ============================ fused kernel ===================================
def _transcriber_kernel(frames_ref, wdft_ref, fb2_ref,
                        w1_ref, s1_ref, w2_ref, s2_ref,
                        w3_ref, s3_ref, wfh_ref, bfh_ref,
                        frame_out_ref, onset_out_ref, *, T, TT):
    t0 = pl.program_id(1) * TT                   # first output frame of tile
    P = TT + 6                                   # mel rows incl. 3-row halos

    # ---- STFT power + mel + log (fp32; Hann window folded into wdft) -------
    frames = frames_ref[0, 0]                                    # (P, 64)
    z = jnp.dot(frames, wdft_ref[...], preferred_element_type=jnp.float32)
    mel = jnp.dot(z * z, fb2_ref[...], preferred_element_type=jnp.float32)
    mel = jnp.log(jnp.maximum(mel, 1e-9))                        # (P, 32)

    # One row-validity mask at mel resolution; sliced views reused below.
    rows = jax.lax.broadcasted_iota(jnp.int32, (P, 1), 0) + (t0 - 3)
    keep = jnp.logical_and(rows >= 0, rows < T)                  # (P, 1)
    mel = jnp.where(keep, mel, 0.0)          # zeros emulate conv zero-padding

    # ---- conv1 (1->8) + BN + ReLU for BOTH stacks (512 output lanes) -------
    melb = mel.astype(COMPUTE_DTYPE)                        # cast before slab
    x1 = jnp.concatenate([melb[0:TT + 4], melb[1:TT + 5], melb[2:TT + 6]],
                         axis=-1)                                # (TT+4, 96)
    c1 = jnp.dot(x1, w1_ref[...], preferred_element_type=jnp.float32) \
        + s1_ref[...]                                            # (TT+4, 512)
    c1 = jnp.where(keep[1:TT + 5], jnp.maximum(c1, 0.0), 0.0)
    c1b = c1.astype(COMPUTE_DTYPE)            # single cast before slab builds

    out_refs = (frame_out_ref, onset_out_ref)
    for k in range(2):                        # 0: frame stack, 1: onset stack
        ck = c1b[:, k * C1_N:(k + 1) * C1_N]                     # (TT+4, 256)

        # conv2 (8->8) + BN + ReLU + MaxPool(1,2) via merged even|odd weights
        x2 = jnp.concatenate([ck[0:TT + 2], ck[1:TT + 3], ck[2:TT + 4]],
                             axis=-1)                            # (TT+2, 768)
        c2 = jnp.dot(x2, w2_ref[k], preferred_element_type=jnp.float32)
        p2 = jnp.maximum(jnp.maximum(c2[:, :C2_N], c2[:, C2_N:]) + s2_ref[k],
                         0.0)                                    # (TT+2, 128)
        p2 = jnp.where(keep[2:TT + 4], p2, 0.0)
        p2b = p2.astype(COMPUTE_DTYPE)

        # conv3 (8->16) + BN + ReLU + MaxPool(1,2)
        x3 = jnp.concatenate([p2b[0:TT], p2b[1:TT + 1], p2b[2:TT + 2]],
                             axis=-1)                            # (TT, 384)
        c3 = jnp.dot(x3, w3_ref[k], preferred_element_type=jnp.float32)
        p3 = jnp.maximum(jnp.maximum(c3[:, :C3_N], c3[:, C3_N:]) + s3_ref[k],
                         0.0)                                    # (TT, 128)

        # fused FC(128->64) + head(64->88), padded to 128 lanes.
        # Dropouts are eval-mode identity.
        y = jnp.dot(p3.astype(COMPUTE_DTYPE), wfh_ref[k],
                    preferred_element_type=jnp.float32) + bfh_ref[k]
        out_refs[k][0] = y                                       # (TT, 128)


# ============================ wrapper ========================================
def transcriber_forward(audio, params):
    B, L = audio.shape
    T = L // HOP_SIZE                    # melspectrogram(audio)[:, :, 1:] frames
    TT = max(8, min(MAX_TT, ((T + 7) // 8) * 8))
    nt = pl.cdiv(T, TT)
    P = TT + 6

    # NOTE: the original forward computes `padded_audio` but never uses it.

    # Pre-build the 64-sample STFT windows (center=True reflect pad, hop 16).
    # Padded frame k = audio_p[16k : 16k+64]; output frame t = padded frame t+1.
    pad = N_FFT // 2
    audio_p = jnp.pad(audio, ((0, 0), (pad, pad)), mode="reflect")
    rem = (-audio_p.shape[1]) % HOP_SIZE
    if rem:
        audio_p = jnp.pad(audio_p, ((0, 0), (0, rem)))
    arow = audio_p.reshape(B, -1, HOP_SIZE)                    # (B, n_rows, 16)
    n_frames = arow.shape[1] - 3                               # frames 0..T
    frames_all = jnp.concatenate([arow[:, q:q + n_frames] for q in range(4)],
                                 axis=-1)                      # (B, n_frames, 64)
    # mel row j of tile s = output frame s*TT + j - 3 = padded frame s*TT + j - 2
    row_idx = jnp.clip(
        jnp.arange(nt)[:, None] * TT + jnp.arange(P)[None, :] - 2,
        0, n_frames - 1)
    frame_tiles = jnp.take(frames_all, row_idx, axis=1)        # (B, nt, P, 64)

    # ---- advisory cost estimate ---------------------------------------------
    per_tile_flops = 2 * (
        P * N_FFT * 128 + P * 128 * N_MELS
        + (TT + 4) * C1_K * (2 * C1_N)
        + 2 * ((TT + 2) * C2_K * (2 * C2_N)
               + TT * C3_K * (2 * C3_N)
               + TT * FC_IN * HEAD_N))
    weight_bytes = ((N_FFT * 128 + 128 * N_MELS) * 4
                    + (C1_K * 2 * C1_N
                       + 2 * (C2_K * 2 * C2_N + C3_K * 2 * C3_N
                              + FC_IN * HEAD_N)) * 2)
    bytes_accessed = (B * nt * P * N_FFT * 4 + weight_bytes
                      + 2 * B * nt * TT * HEAD_N * 4)
    cost = pl.CostEstimate(flops=int(per_tile_flops) * B * nt,
                           transcendentals=int(P * N_MELS) * B * nt,
                           bytes_accessed=int(bytes_accessed))

    frame_raw, onset_raw = pl.pallas_call(
        functools.partial(_transcriber_kernel, T=T, TT=TT),
        out_shape=(jax.ShapeDtypeStruct((B, nt * TT, HEAD_N), jnp.float32),
                   jax.ShapeDtypeStruct((B, nt * TT, HEAD_N), jnp.float32)),
        grid=(B, nt),
        in_specs=[
            pl.BlockSpec((1, 1, P, N_FFT), lambda b, s: (b, s, 0, 0)),
            pl.BlockSpec((N_FFT, 128), lambda b, s: (0, 0)),
            pl.BlockSpec((128, N_MELS), lambda b, s: (0, 0)),
            pl.BlockSpec((C1_K, 2 * C1_N), lambda b, s: (0, 0)),
            pl.BlockSpec((1, 2 * C1_N), lambda b, s: (0, 0)),
            pl.BlockSpec((2, C2_K, 2 * C2_N), lambda b, s: (0, 0, 0)),
            pl.BlockSpec((2, 1, C2_N), lambda b, s: (0, 0, 0)),
            pl.BlockSpec((2, C3_K, 2 * C3_N), lambda b, s: (0, 0, 0)),
            pl.BlockSpec((2, 1, C3_N), lambda b, s: (0, 0, 0)),
            pl.BlockSpec((2, FC_IN, HEAD_N), lambda b, s: (0, 0, 0)),
            pl.BlockSpec((2, 1, HEAD_N), lambda b, s: (0, 0, 0)),
        ],
        out_specs=(pl.BlockSpec((1, TT, HEAD_N), lambda b, s: (b, s, 0)),
                   pl.BlockSpec((1, TT, HEAD_N), lambda b, s: (b, s, 0))),
        compiler_params=pltpu.CompilerParams(
            dimension_semantics=("parallel", "parallel"),
            vmem_limit_bytes=48 * 1024 * 1024),
        cost_estimate=cost,
    )(frame_tiles, params["wdft"], params["fb2"],
      params["w1"], params["s1"], params["w2"], params["s2"],
      params["w3"], params["s3"], params["wfh"], params["bfh"])

    frame_out = frame_raw[:, :T, :N_KEYS]
    onset_out = onset_raw[:, :T, :N_KEYS]
    return frame_out, onset_out


# ============================ parameter construction =========================
def _banded_conv_matrix(w, scale, F, parity):
    """3x3/pad-1 conv over (freq, chan)-packed rows as a banded matmul.

    w: (Cout, Cin, 3, 3).  Returns (3*F*Cin, n_fo*Cout):
      row  = dy*(F*Cin) + f_in*Cin + c_in      (dy = time tap 0..2)
      col  = oi*Cout + c_out, over output freqs f_out in range(parity, F, 2)
             (or all F when parity is None).  BN scale folded into weights.
    """
    Cout, Cin, _, _ = w.shape
    f_outs = np.arange(F) if parity is None else np.arange(parity, F, 2)
    M = np.zeros((3, F, Cin, len(f_outs), Cout), np.float32)
    ws = w * scale[:, None, None, None]
    for oi, fo in enumerate(f_outs):
        for dx in range(3):
            fi = fo + dx - 1
            if 0 <= fi < F:
                M[:, fi, :, oi, :] = np.transpose(ws[:, :, :, dx], (2, 1, 0))
    return M.reshape(3 * F * Cin, len(f_outs) * Cout)


def _fold_bn(bias):
    # eval-mode BN with default init: gamma=1, beta=0, mean=0, var=1
    # TODO(synk): fold real running stats / affine params for trained weights.
    scale = np.full_like(bias, 1.0 / np.sqrt(1.0 + BN_EPS))
    shift = scale * bias
    return scale, shift


def _mel_constants():
    n_freqs = N_FFT // 2 + 1
    n = np.arange(N_FFT)
    window = 0.5 * (1.0 - np.cos(2.0 * np.pi * n / N_FFT))      # periodic Hann
    k = np.arange(N_FFT)[:, None].astype(np.float64)
    f = np.arange(n_freqs)[None, :].astype(np.float64)
    ang = 2.0 * np.pi * k * f / N_FFT
    wdft = np.zeros((N_FFT, 128), np.float32)                   # [win*cos | win*sin]
    wdft[:, :n_freqs] = np.cos(ang) * window[:, None]
    wdft[:, 64:64 + n_freqs] = np.sin(ang) * window[:, None]

    # torchaudio melscale_fbanks (HTK scale, norm=None)
    def hz_to_mel(hz):
        return 2595.0 * np.log10(1.0 + hz / 700.0)

    def mel_to_hz(m):
        return 700.0 * (10.0 ** (m / 2595.0) - 1.0)

    all_freqs = np.linspace(0.0, SAMPLE_RATE // 2, n_freqs)
    m_pts = np.linspace(hz_to_mel(F_MIN), hz_to_mel(F_MAX), N_MELS + 2)
    f_pts = mel_to_hz(m_pts)
    f_diff = f_pts[1:] - f_pts[:-1]
    slopes = f_pts[None, :] - all_freqs[:, None]
    down = -slopes[:, :-2] / f_diff[:-1]
    up = slopes[:, 2:] / f_diff[1:]
    fb = np.maximum(0.0, np.minimum(down, up)).astype(np.float32)  # (33, 32)
    fb2 = np.zeros((128, N_MELS), np.float32)                      # cos & sin halves
    fb2[:n_freqs] = fb
    fb2[64:64 + n_freqs] = fb
    return wdft, fb2


def _init_conv_stack(key):
    ks = jax.random.split(key, 8)

    def rnd(k, shape):
        return np.asarray(0.1 * jax.random.normal(k, shape, dtype=jnp.float32))

    w1 = rnd(ks[0], (CNN_UNIT, 1, 3, 3));             b1 = rnd(ks[1], (CNN_UNIT,))
    w2 = rnd(ks[2], (CNN_UNIT, CNN_UNIT, 3, 3));      b2 = rnd(ks[3], (CNN_UNIT,))
    w3 = rnd(ks[4], (2 * CNN_UNIT, CNN_UNIT, 3, 3));  b3 = rnd(ks[5], (2 * CNN_UNIT,))
    fcw = rnd(ks[6], (FC_UNIT, FC_IN));               fcb = rnd(ks[7], (FC_UNIT,))

    sc1, sh1 = _fold_bn(b1)
    sc2, sh2 = _fold_bn(b2)
    sc3, sh3 = _fold_bn(b3)

    # FC weight rows permuted from PyTorch's (c, f) flatten order to (f, c) packing.
    wfc = np.transpose(fcw.reshape(FC_UNIT, 2 * CNN_UNIT, N_MELS // 4),
                       (2, 1, 0)).reshape(FC_IN, FC_UNIT)
    return dict(
        w1=_banded_conv_matrix(w1, sc1, N_MELS, None),            # (96, 256)
        s1=np.tile(sh1, N_MELS),                                  # (256,)
        w2=np.concatenate([_banded_conv_matrix(w2, sc2, N_MELS, 0),
                           _banded_conv_matrix(w2, sc2, N_MELS, 1)],
                          axis=1),                                # (768, 256) even|odd
        s2=np.tile(sh2, N_MELS // 2)[None, :],                    # (1, 128)
        w3=np.concatenate([_banded_conv_matrix(w3, sc3, N_MELS // 2, 0),
                           _banded_conv_matrix(w3, sc3, N_MELS // 2, 1)],
                          axis=1),                                # (384, 256) even|odd
        s3=np.tile(sh3, N_MELS // 4)[None, :],                    # (1, 128)
        wfc=wfc, bfc=fcb)


def init_params(key):
    k_fs, k_os, k_fh, k_oh = jax.random.split(key, 4)
    stacks = [_init_conv_stack(k_fs), _init_conv_stack(k_os)]   # frame, onset

    heads = []
    for k in (k_fh, k_oh):
        kw, kb = jax.random.split(k)
        hw = np.asarray(0.1 * jax.random.normal(kw, (N_KEYS, FC_UNIT), dtype=jnp.float32))
        hb = np.asarray(0.1 * jax.random.normal(kb, (N_KEYS,), dtype=jnp.float32))
        heads.append((hw, hb))

    # Fused FC+head (eval-mode Dropout between them is identity), padded to 128 lanes.
    wfh, bfh = [], []
    for st, (hw, hb) in zip(stacks, heads):
        W = st["wfc"] @ hw.T                                   # (128, 88)
        bv = st["bfc"] @ hw.T + hb                             # (88,)
        Wp = np.zeros((FC_IN, HEAD_N), np.float32); Wp[:, :N_KEYS] = W
        bp = np.zeros((1, HEAD_N), np.float32);     bp[0, :N_KEYS] = bv
        wfh.append(Wp); bfh.append(bp)

    # conv1 merged across stacks along N (shared mel input -> one 512-lane matmul)
    w1_both = np.concatenate([s["w1"] for s in stacks], axis=1)            # (96, 512)
    s1_both = np.concatenate([s["s1"] for s in stacks], axis=0)[None, :]   # (1, 512)

    def stacked(name, dtype):
        return jnp.asarray(np.stack([s[name] for s in stacks], axis=0), dtype)

    wdft, fb2 = _mel_constants()
    return {
        "wdft": jnp.asarray(wdft), "fb2": jnp.asarray(fb2),
        "w1": jnp.asarray(w1_both, COMPUTE_DTYPE),
        "s1": jnp.asarray(s1_both, jnp.float32),
        "w2": stacked("w2", COMPUTE_DTYPE), "s2": stacked("s2", jnp.float32),
        "w3": stacked("w3", COMPUTE_DTYPE), "s3": stacked("s3", jnp.float32),
        "wfh": jnp.asarray(np.stack(wfh, axis=0), COMPUTE_DTYPE),
        "bfh": jnp.asarray(np.stack(bfh, axis=0), jnp.float32),
    }


# ============================ main ===========================================
if __name__ == "__main__":
    key = jax.random.PRNGKey(0)
    k_audio, k_param = jax.random.split(key)

    B = 2
    L = 128                      # -> T = L // HOP_SIZE = 8 frames
    audio = jax.random.normal(k_audio, (B, L), dtype=jnp.float32)
    params = init_params(k_param)

    frame_out, onset_out = jax.jit(transcriber_forward)(audio, params)
    jax.block_until_ready((frame_out, onset_out))

    T = L // HOP_SIZE
    assert frame_out.shape == (B, T, N_KEYS), frame_out.shape
    assert onset_out.shape == (B, T, N_KEYS), onset_out.shape
    assert bool(jnp.all(jnp.isfinite(frame_out)))
    assert bool(jnp.all(jnp.isfinite(onset_out)))
    print("KERNEL_OK")
</pallas_src>

<mosaic_0001>
module attributes {stable_mosaic.version = 11 : i64} {
  func.func @_transcriber_kernel(%arg0: i32, %arg1: i32, %arg2: memref<1x1x14x64xf32, #tpu.memory_space<vmem>>, %arg3: memref<64x128xf32, #tpu.memory_space<vmem>>, %arg4: memref<128x32xf32, #tpu.memory_space<vmem>>, %arg5: memref<96x512xbf16, #tpu.memory_space<vmem>>, %arg6: memref<1x512xf32, #tpu.memory_space<vmem>>, %arg7: memref<2x768x256xbf16, #tpu.memory_space<vmem>>, %arg8: memref<2x1x128xf32, #tpu.memory_space<vmem>>, %arg9: memref<2x384x256xbf16, #tpu.memory_space<vmem>>, %arg10: memref<2x1x128xf32, #tpu.memory_space<vmem>>, %arg11: memref<2x128x128xbf16, #tpu.memory_space<vmem>>, %arg12: memref<2x1x128xf32, #tpu.memory_space<vmem>>, %arg13: memref<1x8x128xf32, #tpu.memory_space<vmem>>, %arg14: memref<1x8x128xf32, #tpu.memory_space<vmem>>) attributes {dimension_semantics = [#tpu.dimension_semantics<parallel>, #tpu.dimension_semantics<parallel>], iteration_bounds = array<i64: 2, 1>, scalar_prefetch = 0 : i64, scratch_operands = 0 : i64, tpu.core_type = #tpu.core_type<tc>, window_params = [{transform_indices = @transform_0, window_bounds = array<i64: 1, 1, 14, 64>}, {pipeline_mode = #tpu.pipeline_mode<synchronous>, transform_indices = @transform_1, window_bounds = array<i64: 64, 128>}, {pipeline_mode = #tpu.pipeline_mode<synchronous>, transform_indices = @transform_2, window_bounds = array<i64: 128, 32>}, {pipeline_mode = #tpu.pipeline_mode<synchronous>, transform_indices = @transform_3, window_bounds = array<i64: 96, 512>}, {pipeline_mode = #tpu.pipeline_mode<synchronous>, transform_indices = @transform_4, window_bounds = array<i64: 1, 512>}, {pipeline_mode = #tpu.pipeline_mode<synchronous>, transform_indices = @transform_5, window_bounds = array<i64: 2, 768, 256>}, {pipeline_mode = #tpu.pipeline_mode<synchronous>, transform_indices = @transform_6, window_bounds = array<i64: 2, 1, 128>}, {pipeline_mode = #tpu.pipeline_mode<synchronous>, transform_indices = @transform_7, window_bounds = array<i64: 2, 384, 256>}, {pipeline_mode = #tpu.pipeline_mode<synchronous>, transform_indices = @transform_8, window_bounds = array<i64: 2, 1, 128>}, {pipeline_mode = #tpu.pipeline_mode<synchronous>, transform_indices = @transform_9, window_bounds = array<i64: 2, 128, 128>}, {pipeline_mode = #tpu.pipeline_mode<synchronous>, transform_indices = @transform_10, window_bounds = array<i64: 2, 1, 128>}, {transform_indices = @transform_11, window_bounds = array<i64: 1, 8, 128>}, {transform_indices = @transform_12, window_bounds = array<i64: 1, 8, 128>}]} {
    %c8_i32 = arith.constant 8 : i32
    %0 = arith.muli %arg1, %c8_i32 : i32
    %c0 = arith.constant 0 : index
    %c0_0 = arith.constant 0 : index
    %c0_1 = arith.constant 0 : index
    %c0_2 = arith.constant 0 : index
    %1 = vector.load %arg2[%c0, %c0_0, %c0_1, %c0_2] : memref<1x1x14x64xf32, #tpu.memory_space<vmem>>, vector<1x1x14x64xf32>
    %2 = vector.shape_cast %1 : vector<1x1x14x64xf32> to vector<14x64xf32>
    %c0_3 = arith.constant 0 : index
    %c0_4 = arith.constant 0 : index
    %3 = vector.load %arg3[%c0_3, %c0_4] : memref<64x128xf32, #tpu.memory_space<vmem>>, vector<64x128xf32>
    %cst = arith.constant dense<0.000000e+00> : vector<14x128xf32>
    %4 = tpu.matmul %2, %3, %cst {dimension_numbers = #tpu.dot_dimension_numbers<[1], [0], [0], [1], [0, 0, 1, 1], [], []>} : vector<14x64xf32>, vector<64x128xf32>, vector<14x128xf32> -> vector<14x128xf32>
    %5 = arith.mulf %4, %4 : vector<14x128xf32>
    %c0_5 = arith.constant 0 : index
    %c0_6 = arith.constant 0 : index
    %6 = vector.load %arg4[%c0_5, %c0_6] : memref<128x32xf32, #tpu.memory_space<vmem>>, vector<128x32xf32>
    %cst_7 = arith.constant dense<0.000000e+00> : vector<14x32xf32>
    %7 = tpu.matmul %5, %6, %cst_7 {dimension_numbers = #tpu.dot_dimension_numbers<[1], [0], [0], [1], [0, 0, 1, 1], [], []>} : vector<14x128xf32>, vector<128x32xf32>, vector<14x32xf32> -> vector<14x32xf32>
    %cst_8 = arith.constant 9.99999971E-10 : f32
    %8 = vector.broadcast %cst_8 : f32 to vector<14x32xf32>
    %9 = arith.maximumf %7, %8 : vector<14x32xf32>
    %10 = math.log %9 : vector<14x32xf32>
    %11 = tpu.iota {dimensions = array<i32: 0>} : vector<14x1xi32>
    %c3_i32 = arith.constant 3 : i32
    %12 = arith.subi %0, %c3_i32 : i32
    %13 = vector.broadcast %12 : i32 to vector<14x1xi32>
    %14 = arith.addi %11, %13 : vector<14x1xi32>
    %c0_i32 = arith.constant 0 : i32
    %15 = vector.broadcast %c0_i32 : i32 to vector<14x1xi32>
    %16 = arith.cmpi sge, %14, %15 : vector<14x1xi32>
    %c8_i32_9 = arith.constant 8 : i32
    %17 = vector.broadcast %c8_i32_9 : i32 to vector<14x1xi32>
    %18 = arith.cmpi slt, %14, %17 : vector<14x1xi32>
    %19 = arith.andi %16, %18 : vector<14x1xi1>
    %cst_10 = arith.constant 0.000000e+00 : f32
    %20 = vector.shape_cast %19 : vector<14x1xi1> to vector<14x1xi1>
    %21 = vector.broadcast %20 : vector<14x1xi1> to vector<14x32xi1>
    %22 = vector.broadcast %cst_10 : f32 to vector<14x32xf32>
    %23 = arith.select %21, %10, %22 : vector<14x32xi1>, vector<14x32xf32>
    %24 = arith.truncf %23 : vector<14x32xf32> to vector<14x32xbf16>
    %25 = vector.extract_strided_slice %24 {offsets = [0, 0], sizes = [12, 32], strides = [1, 1]} : vector<14x32xbf16> to vector<12x32xbf16>
    %26 = vector.extract_strided_slice %24 {offsets = [1, 0], sizes = [12, 32], strides = [1, 1]} : vector<14x32xbf16> to vector<12x32xbf16>
    %27 = vector.extract_strided_slice %24 {offsets = [2, 0], sizes = [12, 32], strides = [1, 1]} : vector<14x32xbf16> to vector<12x32xbf16>
    %28 = tpu.concatenate %25, %26, %27 in 1 : vector<12x32xbf16>, vector<12x32xbf16>, vector<12x32xbf16> -> vector<12x96xbf16>
    %c0_11 = arith.constant 0 : index
    %c0_12 = arith.constant 0 : index
    %29 = vector.load %arg5[%c0_11, %c0_12] : memref<96x512xbf16, #tpu.memory_space<vmem>>, vector<96x512xbf16>
    %cst_13 = arith.constant dense<0.000000e+00> : vector<12x512xf32>
    %30 = tpu.matmul %28, %29, %cst_13 {dimension_numbers = #tpu.dot_dimension_numbers<[1], [0], [0], [1], [0, 0, 1, 1], [], []>} : vector<12x96xbf16>, vector<96x512xbf16>, vector<12x512xf32> -> vector<12x512xf32>
    %c0_14 = arith.constant 0 : index
    %c0_15 = arith.constant 0 : index
    %31 = vector.load %arg6[%c0_14, %c0_15] : memref<1x512xf32, #tpu.memory_space<vmem>>, vector<1x512xf32>
    %32 = vector.broadcast %31 : vector<1x512xf32> to vector<12x512xf32>
    %33 = arith.addf %30, %32 : vector<12x512xf32>
    %34 = vector.extract_strided_slice %19 {offsets = [1, 0], sizes = [12, 1], strides = [1, 1]} : vector<14x1xi1> to vector<12x1xi1>
    %cst_16 = arith.constant 0.000000e+00 : f32
    %35 = vector.broadcast %cst_16 : f32 to vector<12x512xf32>
    %36 = arith.maximumf %33, %35 : vector<12x512xf32>
    %cst_17 = arith.constant 0.000000e+00 : f32
    %37 = vector.shape_cast %34 : vector<12x1xi1> to vector<12x1xi1>
    %38 = vector.broadcast %37 : vector<12x1xi1> to vector<12x512xi1>
    %39 = vector.broadcast %cst_17 : f32 to vector<12x512xf32>
    %40 = arith.select %38, %36, %39 : vector<12x512xi1>, vector<12x512xf32>
    %41 = arith.truncf %40 : vector<12x512xf32> to vector<12x512xbf16>
    %42 = vector.extract_strided_slice %41 {offsets = [0, 0], sizes = [12, 256], strides = [1, 1]} : vector<12x512xbf16> to vector<12x256xbf16>
    %43 = vector.extract_strided_slice %42 {offsets = [0, 0], sizes = [10, 256], strides = [1, 1]} : vector<12x256xbf16> to vector<10x256xbf16>
    %44 = vector.extract_strided_slice %42 {offsets = [1, 0], sizes = [10, 256], strides = [1, 1]} : vector<12x256xbf16> to vector<10x256xbf16>
    %45 = vector.extract_strided_slice %42 {offsets = [2, 0], sizes = [10, 256], strides = [1, 1]} : vector<12x256xbf16> to vector<10x256xbf16>
    %46 = tpu.concatenate %43, %44, %45 in 1 : vector<10x256xbf16>, vector<10x256xbf16>, vector<10x256xbf16> -> vector<10x768xbf16>
    %c0_18 = arith.constant 0 : index
    %c0_19 = arith.constant 0 : index
    %c0_20 = arith.constant 0 : index
    %47 = vector.load %arg7[%c0_18, %c0_19, %c0_20] : memref<2x768x256xbf16, #tpu.memory_space<vmem>>, vector<1x768x256xbf16>
    %48 = vector.shape_cast %47 : vector<1x768x256xbf16> to vector<768x256xbf16>
    %cst_21 = arith.constant dense<0.000000e+00> : vector<10x256xf32>
    %49 = tpu.matmul %46, %48, %cst_21 {dimension_numbers = #tpu.dot_dimension_numbers<[1], [0], [0], [1], [0, 0, 1, 1], [], []>} : vector<10x768xbf16>, vector<768x256xbf16>, vector<10x256xf32> -> vector<10x256xf32>
    %50 = vector.extract_strided_slice %49 {offsets = [0, 0], sizes = [10, 128], strides = [1, 1]} : vector<10x256xf32> to vector<10x128xf32>
    %51 = vector.extract_strided_slice %49 {offsets = [0, 128], sizes = [10, 128], strides = [1, 1]} : vector<10x256xf32> to vector<10x128xf32>
    %52 = arith.maximumf %50, %51 : vector<10x128xf32>
    %c0_22 = arith.constant 0 : index
    %c0_23 = arith.constant 0 : index
    %c0_24 = arith.constant 0 : index
    %53 = vector.load %arg8[%c0_22, %c0_23, %c0_24] : memref<2x1x128xf32, #tpu.memory_space<vmem>>, vector<1x1x128xf32>
    %54 = vector.shape_cast %53 : vector<1x1x128xf32> to vector<1x128xf32>
    %55 = vector.broadcast %54 : vector<1x128xf32> to vector<10x128xf32>
    %56 = arith.addf %52, %55 : vector<10x128xf32>
    %cst_25 = arith.constant 0.000000e+00 : f32
    %57 = vector.broadcast %cst_25 : f32 to vector<10x128xf32>
    %58 = arith.maximumf %56, %57 : vector<10x128xf32>
    %59 = vector.extract_strided_slice %19 {offsets = [2, 0], sizes = [10, 1], strides = [1, 1]} : vector<14x1xi1> to vector<10x1xi1>
    %cst_26 = arith.constant 0.000000e+00 : f32
    %60 = vector.shape_cast %59 : vector<10x1xi1> to vector<10x1xi1>
    %61 = vector.broadcast %60 : vector<10x1xi1> to vector<10x128xi1>
    %62 = vector.broadcast %cst_26 : f32 to vector<10x128xf32>
    %63 = arith.select %61, %58, %62 : vector<10x128xi1>, vector<10x128xf32>
    %64 = arith.truncf %63 : vector<10x128xf32> to vector<10x128xbf16>
    %65 = vector.extract_strided_slice %64 {offsets = [0, 0], sizes = [8, 128], strides = [1, 1]} : vector<10x128xbf16> to vector<8x128xbf16>
    %66 = vector.extract_strided_slice %64 {offsets = [1, 0], sizes = [8, 128], strides = [1, 1]} : vector<10x128xbf16> to vector<8x128xbf16>
    %67 = vector.extract_strided_slice %64 {offsets = [2, 0], sizes = [8, 128], strides = [1, 1]} : vector<10x128xbf16> to vector<8x128xbf16>
    %68 = tpu.concatenate %65, %66, %67 in 1 : vector<8x128xbf16>, vector<8x128xbf16>, vector<8x128xbf16> -> vector<8x384xbf16>
    %c0_27 = arith.constant 0 : index
    %c0_28 = arith.constant 0 : index
    %c0_29 = arith.constant 0 : index
    %69 = vector.load %arg9[%c0_27, %c0_28, %c0_29] : memref<2x384x256xbf16, #tpu.memory_space<vmem>>, vector<1x384x256xbf16>
    %70 = vector.shape_cast %69 : vector<1x384x256xbf16> to vector<384x256xbf16>
    %cst_30 = arith.constant dense<0.000000e+00> : vector<8x256xf32>
    %71 = tpu.matmul %68, %70, %cst_30 {dimension_numbers = #tpu.dot_dimension_numbers<[1], [0], [0], [1], [0, 0, 1, 1], [], []>} : vector<8x384xbf16>, vector<384x256xbf16>, vector<8x256xf32> -> vector<8x256xf32>
    %72 = vector.extract_strided_slice %71 {offsets = [0, 0], sizes = [8, 128], strides = [1, 1]} : vector<8x256xf32> to vector<8x128xf32>
    %73 = vector.extract_strided_slice %71 {offsets = [0, 128], sizes = [8, 128], strides = [1, 1]} : vector<8x256xf32> to vector<8x128xf32>
    %74 = arith.maximumf %72, %73 : vector<8x128xf32>
    %c0_31 = arith.constant 0 : index
    %c0_32 = arith.constant 0 : index
    %c0_33 = arith.constant 0 : index
    %75 = vector.load %arg10[%c0_31, %c0_32, %c0_33] : memref<2x1x128xf32, #tpu.memory_space<vmem>>, vector<1x1x128xf32>
    %76 = vector.shape_cast %75 : vector<1x1x128xf32> to vector<1x128xf32>
    %77 = vector.broadcast %76 : vector<1x128xf32> to vector<8x128xf32>
    %78 = arith.addf %74, %77 : vector<8x128xf32>
    %cst_34 = arith.constant 0.000000e+00 : f32
    %79 = vector.broadcast %cst_34 : f32 to vector<8x128xf32>
    %80 = arith.maximumf %78, %79 : vector<8x128xf32>
    %81 = arith.truncf %80 : vector<8x128xf32> to vector<8x128xbf16>
    %c0_35 = arith.constant 0 : index
    %c0_36 = arith.constant 0 : index
    %c0_37 = arith.constant 0 : index
    %82 = vector.load %arg11[%c0_35, %c0_36, %c0_37] : memref<2x128x128xbf16, #tpu.memory_space<vmem>>, vector<1x128x128xbf16>
    %83 = vector.shape_cast %82 : vector<1x128x128xbf16> to vector<128x128xbf16>
    %cst_38 = arith.constant dense<0.000000e+00> : vector<8x128xf32>
    %84 = tpu.matmul %81, %83, %cst_38 {dimension_numbers = #tpu.dot_dimension_numbers<[1], [0], [0], [1], [0, 0, 1, 1], [], []>} : vector<8x128xbf16>, vector<128x128xbf16>, vector<8x128xf32> -> vector<8x128xf32>
    %c0_39 = arith.constant 0 : index
    %c0_40 = arith.constant 0 : index
    %c0_41 = arith.constant 0 : index
    %85 = vector.load %arg12[%c0_39, %c0_40, %c0_41] : memref<2x1x128xf32, #tpu.memory_space<vmem>>, vector<1x1x128xf32>
    %86 = vector.shape_cast %85 : vector<1x1x128xf32> to vector<1x128xf32>
    %87 = vector.broadcast %86 : vector<1x128xf32> to vector<8x128xf32>
    %88 = arith.addf %84, %87 : vector<8x128xf32>
    %c0_42 = arith.constant 0 : index
    %c0_43 = arith.constant 0 : index
    %c0_44 = arith.constant 0 : index
    %89 = vector.load %arg13[%c0_42, %c0_43, %c0_44] : memref<1x8x128xf32, #tpu.memory_space<vmem>>, vector<1x8x128xf32>
    %90 = vector.shape_cast %89 : vector<1x8x128xf32> to vector<8x128xf32>
    %91 = vector.shape_cast %88 : vector<8x128xf32> to vector<1x8x128xf32>
    tpu.vector_store %arg13[%c0_42, %c0_43, %c0_44], %91 {strides = array<i32>} : memref<1x8x128xf32, #tpu.memory_space<vmem>>, vector<1x8x128xf32>,
    %92 = vector.extract_strided_slice %41 {offsets = [0, 256], sizes = [12, 256], strides = [1, 1]} : vector<12x512xbf16> to vector<12x256xbf16>
    %93 = vector.extract_strided_slice %92 {offsets = [0, 0], sizes = [10, 256], strides = [1, 1]} : vector<12x256xbf16> to vector<10x256xbf16>
    %94 = vector.extract_strided_slice %92 {offsets = [1, 0], sizes = [10, 256], strides = [1, 1]} : vector<12x256xbf16> to vector<10x256xbf16>
    %95 = vector.extract_strided_slice %92 {offsets = [2, 0], sizes = [10, 256], strides = [1, 1]} : vector<12x256xbf16> to vector<10x256xbf16>
    %96 = tpu.concatenate %93, %94, %95 in 1 : vector<10x256xbf16>, vector<10x256xbf16>, vector<10x256xbf16> -> vector<10x768xbf16>
    %c1 = arith.constant 1 : index
    %c0_45 = arith.constant 0 : index
    %c0_46 = arith.constant 0 : index
    %97 = vector.load %arg7[%c1, %c0_45, %c0_46] : memref<2x768x256xbf16, #tpu.memory_space<vmem>>, vector<1x768x256xbf16>
    %98 = vector.shape_cast %97 : vector<1x768x256xbf16> to vector<768x256xbf16>
    %cst_47 = arith.constant dense<0.000000e+00> : vector<10x256xf32>
    %99 = tpu.matmul %96, %98, %cst_47 {dimension_numbers = #tpu.dot_dimension_numbers<[1], [0], [0], [1], [0, 0, 1, 1], [], []>} : vector<10x768xbf16>, vector<768x256xbf16>, vector<10x256xf32> -> vector<10x256xf32>
    %100 = vector.extract_strided_slice %99 {offsets = [0, 0], sizes = [10, 128], strides = [1, 1]} : vector<10x256xf32> to vector<10x128xf32>
    %101 = vector.extract_strided_slice %99 {offsets = [0, 128], sizes = [10, 128], strides = [1, 1]} : vector<10x256xf32> to vector<10x128xf32>
    %102 = arith.maximumf %100, %101 : vector<10x128xf32>
    %c1_48 = arith.constant 1 : index
    %c0_49 = arith.constant 0 : index
    %c0_50 = arith.constant 0 : index
    %103 = vector.load %arg8[%c1_48, %c0_49, %c0_50] : memref<2x1x128xf32, #tpu.memory_space<vmem>>, vector<1x1x128xf32>
    %104 = vector.shape_cast %103 : vector<1x1x128xf32> to vector<1x128xf32>
    %105 = vector.broadcast %104 : vector<1x128xf32> to vector<10x128xf32>
    %106 = arith.addf %102, %105 : vector<10x128xf32>
    %cst_51 = arith.constant 0.000000e+00 : f32
    %107 = vector.broadcast %cst_51 : f32 to vector<10x128xf32>
    %108 = arith.maximumf %106, %107 : vector<10x128xf32>
    %109 = vector.extract_strided_slice %19 {offsets = [2, 0], sizes = [10, 1], strides = [1, 1]} : vector<14x1xi1> to vector<10x1xi1>
    %cst_52 = arith.constant 0.000000e+00 : f32
    %110 = vector.shape_cast %109 : vector<10x1xi1> to vector<10x1xi1>
    %111 = vector.broadcast %110 : vector<10x1xi1> to vector<10x128xi1>
    %112 = vector.broadcast %cst_52 : f32 to vector<10x128xf32>
    %113 = arith.select %111, %108, %112 : vector<10x128xi1>, vector<10x128xf32>
    %114 = arith.truncf %113 : vector<10x128xf32> to vector<10x128xbf16>
    %115 = vector.extract_strided_slice %114 {offsets = [0, 0], sizes = [8, 128], strides = [1, 1]} : vector<10x128xbf16> to vector<8x128xbf16>
    %116 = vector.extract_strided_slice %114 {offsets = [1, 0], sizes = [8, 128], strides = [1, 1]} : vector<10x128xbf16> to vector<8x128xbf16>
    %117 = vector.extract_strided_slice %114 {offsets = [2, 0], sizes = [8, 128], strides = [1, 1]} : vector<10x128xbf16> to vector<8x128xbf16>
    %118 = tpu.concatenate %115, %116, %117 in 1 : vector<8x128xbf16>, vector<8x128xbf16>, vector<8x128xbf16> -> vector<8x384xbf16>
    %c1_53 = arith.constant 1 : index
    %c0_54 = arith.constant 0 : index
    %c0_55 = arith.constant 0 : index
    %119 = vector.load %arg9[%c1_53, %c0_54, %c0_55] : memref<2x384x256xbf16, #tpu.memory_space<vmem>>, vector<1x384x256xbf16>
    %120 = vector.shape_cast %119 : vector<1x384x256xbf16> to vector<384x256xbf16>
    %cst_56 = arith.constant dense<0.000000e+00> : vector<8x256xf32>
    %121 = tpu.matmul %118, %120, %cst_56 {dimension_numbers = #tpu.dot_dimension_numbers<[1], [0], [0], [1], [0, 0, 1, 1], [], []>} : vector<8x384xbf16>, vector<384x256xbf16>, vector<8x256xf32> -> vector<8x256xf32>
    %122 = vector.extract_strided_slice %121 {offsets = [0, 0], sizes = [8, 128], strides = [1, 1]} : vector<8x256xf32> to vector<8x128xf32>
    %123 = vector.extract_strided_slice %121 {offsets = [0, 128], sizes = [8, 128], strides = [1, 1]} : vector<8x256xf32> to vector<8x128xf32>
    %124 = arith.maximumf %122, %123 : vector<8x128xf32>
    %c1_57 = arith.constant 1 : index
    %c0_58 = arith.constant 0 : index
    %c0_59 = arith.constant 0 : index
    %125 = vector.load %arg10[%c1_57, %c0_58, %c0_59] : memref<2x1x128xf32, #tpu.memory_space<vmem>>, vector<1x1x128xf32>
    %126 = vector.shape_cast %125 : vector<1x1x128xf32> to vector<1x128xf32>
    %127 = vector.broadcast %126 : vector<1x128xf32> to vector<8x128xf32>
    %128 = arith.addf %124, %127 : vector<8x128xf32>
    %cst_60 = arith.constant 0.000000e+00 : f32
    %129 = vector.broadcast %cst_60 : f32 to vector<8x128xf32>
    %130 = arith.maximumf %128, %129 : vector<8x128xf32>
    %131 = arith.truncf %130 : vector<8x128xf32> to vector<8x128xbf16>
    %c1_61 = arith.constant 1 : index
    %c0_62 = arith.constant 0 : index
    %c0_63 = arith.constant 0 : index
    %132 = vector.load %arg11[%c1_61, %c0_62, %c0_63] : memref<2x128x128xbf16, #tpu.memory_space<vmem>>, vector<1x128x128xbf16>
    %133 = vector.shape_cast %132 : vector<1x128x128xbf16> to vector<128x128xbf16>
    %cst_64 = arith.constant dense<0.000000e+00> : vector<8x128xf32>
    %134 = tpu.matmul %131, %133, %cst_64 {dimension_numbers = #tpu.dot_dimension_numbers<[1], [0], [0], [1], [0, 0, 1, 1], [], []>} : vector<8x128xbf16>, vector<128x128xbf16>, vector<8x128xf32> -> vector<8x128xf32>
    %c1_65 = arith.constant 1 : index
    %c0_66 = arith.constant 0 : index
    %c0_67 = arith.constant 0 : index
    %135 = vector.load %arg12[%c1_65, %c0_66, %c0_67] : memref<2x1x128xf32, #tpu.memory_space<vmem>>, vector<1x1x128xf32>
    %136 = vector.shape_cast %135 : vector<1x1x128xf32> to vector<1x128xf32>
    %137 = vector.broadcast %136 : vector<1x128xf32> to vector<8x128xf32>
    %138 = arith.addf %134, %137 : vector<8x128xf32>
    %c0_68 = arith.constant 0 : index
    %c0_69 = arith.constant 0 : index
    %c0_70 = arith.constant 0 : index
    %139 = vector.load %arg14[%c0_68, %c0_69, %c0_70] : memref<1x8x128xf32, #tpu.memory_space<vmem>>, vector<1x8x128xf32>
    %140 = vector.shape_cast %139 : vector<1x8x128xf32> to vector<8x128xf32>
    %141 = vector.shape_cast %138 : vector<8x128xf32> to vector<1x8x128xf32>
    tpu.vector_store %arg14[%c0_68, %c0_69, %c0_70], %141 {strides = array<i32>} : memref<1x8x128xf32, #tpu.memory_space<vmem>>, vector<1x8x128xf32>,
    return
  }
  func.func @transform_0(%arg0: i32, %arg1: i32) -> (i32, i32, i32, i32) {
    %c0_i32 = arith.constant 0 : i32
    %c0_i32_0 = arith.constant 0 : i32
    %c0_i32_1 = arith.constant 0 : i32
    return %arg0, %arg1, %c0_i32, %c0_i32_0 : i32, i32, i32, i32
  }
  func.func @transform_1(%arg0: i32, %arg1: i32) -> (i32, i32) {
    %c0_i32 = arith.constant 0 : i32
    %c0_i32_0 = arith.constant 0 : i32
    %c0_i32_1 = arith.constant 0 : i32
    return %c0_i32, %c0_i32_0 : i32, i32
  }
  func.func @transform_2(%arg0: i32, %arg1: i32) -> (i32, i32) {
    %c0_i32 = arith.constant 0 : i32
    %c0_i32_0 = arith.constant 0 : i32
    %c0_i32_1 = arith.constant 0 : i32
    return %c0_i32, %c0_i32_0 : i32, i32
  }
  func.func @transform_3(%arg0: i32, %arg1: i32) -> (i32, i32) {
    %c0_i32 = arith.constant 0 : i32
    %c0_i32_0 = arith.constant 0 : i32
    %c0_i32_1 = arith.constant 0 : i32
    return %c0_i32, %c0_i32_0 : i32, i32
  }
  func.func @transform_4(%arg0: i32, %arg1: i32) -> (i32, i32) {
    %c0_i32 = arith.constant 0 : i32
    %c0_i32_0 = arith.constant 0 : i32
    %c0_i32_1 = arith.constant 0 : i32
    return %c0_i32, %c0_i32_0 : i32, i32
  }
  func.func @transform_5(%arg0: i32, %arg1: i32) -> (i32, i32, i32) {
    %c0_i32 = arith.constant 0 : i32
    %c0_i32_0 = arith.constant 0 : i32
    %c0_i32_1 = arith.constant 0 : i32
    %c0_i32_2 = arith.constant 0 : i32
    return %c0_i32, %c0_i32_0, %c0_i32_1 : i32, i32, i32
  }
  func.func @transform_6(%arg0: i32, %arg1: i32) -> (i32, i32, i32) {
    %c0_i32 = arith.constant 0 : i32
    %c0_i32_0 = arith.constant 0 : i32
    %c0_i32_1 = arith.constant 0 : i32
    %c0_i32_2 = arith.constant 0 : i32
    return %c0_i32, %c0_i32_0, %c0_i32_1 : i32, i32, i32
  }
  func.func @transform_7(%arg0: i32, %arg1: i32) -> (i32, i32, i32) {
    %c0_i32 = arith.constant 0 : i32
    %c0_i32_0 = arith.constant 0 : i32
    %c0_i32_1 = arith.constant 0 : i32
    %c0_i32_2 = arith.constant 0 : i32
    return %c0_i32, %c0_i32_0, %c0_i32_1 : i32, i32, i32
  }
  func.func @transform_8(%arg0: i32, %arg1: i32) -> (i32, i32, i32) {
    %c0_i32 = arith.constant 0 : i32
    %c0_i32_0 = arith.constant 0 : i32
    %c0_i32_1 = arith.constant 0 : i32
    %c0_i32_2 = arith.constant 0 : i32
    return %c0_i32, %c0_i32_0, %c0_i32_1 : i32, i32, i32
  }
  func.func @transform_9(%arg0: i32, %arg1: i32) -> (i32, i32, i32) {
    %c0_i32 = arith.constant 0 : i32
    %c0_i32_0 = arith.constant 0 : i32
    %c0_i32_1 = arith.constant 0 : i32
    %c0_i32_2 = arith.constant 0 : i32
    return %c0_i32, %c0_i32_0, %c0_i32_1 : i32, i32, i32
  }
  func.func @transform_10(%arg0: i32, %arg1: i32) -> (i32, i32, i32) {
    %c0_i32 = arith.constant 0 : i32
    %c0_i32_0 = arith.constant 0 : i32
    %c0_i32_1 = arith.constant 0 : i32
    %c0_i32_2 = arith.constant 0 : i32
    return %c0_i32, %c0_i32_0, %c0_i32_1 : i32, i32, i32
  }
  func.func @transform_11(%arg0: i32, %arg1: i32) -> (i32, i32, i32) {
    %c0_i32 = arith.constant 0 : i32
    %c0_i32_0 = arith.constant 0 : i32
    return %arg0, %arg1, %c0_i32 : i32, i32, i32
  }
  func.func @transform_12(%arg0: i32, %arg1: i32) -> (i32, i32, i32) {
    %c0_i32 = arith.constant 0 : i32
    %c0_i32_0 = arith.constant 0 : i32
    return %arg0, %arg1, %c0_i32 : i32, i32, i32
  }
}

</mosaic_0001>

<bundles_post_ra>
// kernel: transcriber_forward.1
= control target key start
LH: loop header
LB: loop body
LE: loop exit
PB: predicated region body
PF: predicated region fallthrough
CT: control target
= control target key end

     0   :  { %s6054_s0 = inlined_call_operand.vmem [shape: f32[2,1,14,64], index: 0, kind: input, shape index: {}]   ;;  %s6055_s1 = inlined_call_operand.hbm [shape: f32[64,128], index: 1, kind: input, shape index: {}]   ;;  %s6056_s2 = inlined_call_operand.vmem [shape: f32[128,32], index: 2, kind: input, shape index: {}]   ;;  %s6057_s3 = inlined_call_operand.hbm [shape: bf16[96,512], index: 3, kind: input, shape index: {}]   ;;  %s6058_s4 = inlined_call_operand.vmem [shape: f32[1,512], index: 4, kind: input, shape index: {}]   ;;  %s6059_s5 = inlined_call_operand.hbm [shape: bf16[2,768,256], index: 5, kind: input, shape index: {}]   ;;  %s6060_s6 = inlined_call_operand.vmem [shape: f32[2,1,128], index: 6, kind: input, shape index: {}]   ;;  %s6061_s7 = inlined_call_operand.vmem [shape: bf16[2,384,256], index: 7, kind: input, shape index: {}]   ;;  %s6062_s8 = inlined_call_operand.vmem [shape: f32[2,1,128], index: 8, kind: input, shape index: {}]   ;;  %s6063_s9 = inlined_call_operand.vmem [shape: bf16[2,128,128], index: 9, kind: input, shape index: {}]   ;;  %s6064_s10 = inlined_call_operand.vmem [shape: f32[2,1,128], index: 10, kind: input, shape index: {}]   ;;  %s6065_s11 = inlined_call_operand.hbm [shape: f32[2,8,128], index: 11, kind: output, shape index: {0}]   ;;  %s6066_s12 = inlined_call_operand.hbm [shape: f32[2,8,128], index: 12, kind: output, shape index: {1}]  }
   0x1   :  { %6080 = sst [smem:[#allocation22_spill]] %s6057_s3 }
   0x2   :  { %6081 = sst [smem:[#allocation23_spill]] %s6065_s11 }
   0x3   :  { %6082 = sst [smem:[#allocation24_spill]] %s6066_s12 }
   0x4   :  { %18 = vsyncpa [#allocation3], 0 }
   0x5   :  { %19 = vsyncpa [#allocation6], 0 }
   0x6   :  { %20 = vsyncpa [#allocation4], 0 }
   0x7   :  { %22 = vsyncpa [#allocation4 + $0x1], 0 }
   0x8   :  { %23 = vsyncpa [#allocation10], 0 }
   0x9   :  { %25 = vsyncpa [#allocation10 + $0x1], 0  ;;  %s5298_s21 = smov 0   ;;  %s5300_s22 = smov 0  }
   0xa   :  { %s5302_s23 = smov 0   ;;  %s5304_s24 = smov 0  }
   0xb   :  { %s5306_s25 = smov 0   ;;  %s5308_s26 = smov 0  }
   0xc LB: > { %6083 = sst [smem:[#allocation15_spill]] %s5197_s21  ;;  %s3788_s27 = sadd.s32 4294967295, %s5217_s26   ;;  %s5217_s26 = sphi %s5308_s26, %s31_s26   ;;  %s5213_s25 = sphi %s5306_s25, %s6109_s25   ;;  %s5209_s24 = sphi %s5304_s24, %s6108_s24   ;;  %s5205_s23 = sphi %s5302_s23, %s6107_s23   ;;  %s5201_s22 = sphi %s5300_s22, %s6111_s22   ;;  %s5197_s21 = sphi %s5298_s21, %s6110_s21  }
   0xd   : > { %6084 = sst [smem:[#allocation16_spill]] %s5205_s23  ;;  %s3789_s28 = sadd.s32 4294967294, %s5217_s26  }
   0xe   : > { %6085 = sst [smem:[#allocation17_spill]] %s5213_s25  ;;  %s43_s29 = sadd.s32 1, %s5213_s25 }
   0xf   : > { %6086 = sst [smem:[#allocation18_spill]] %s5217_s26  ;;  %s290_s30 = sadd.s32 1, %s5205_s23 }
  0x10   : > { %p45_p0 = scmp.ge.s32.totalorder %s43_s29, 2  ;;  %p300_p1 = scmp.ne.s32.totalorder %s5205_s23, %s5201_s22 }
  0x11   : > { %p301_p2 = scmp.eq.s32.totalorder %s3788_s27, 1  ;;  %p306_p3 = scmp.ne.s32.totalorder %s5201_s22, %s5197_s21 }
  0x12   : > { %s6113_s29 = smov (%p45_p0, %s43_s29), 0  ;;  %p307_p5 = scmp.eq.s32.totalorder %s3789_s28, 1 }
  0x13   : > { %6087 = sst [smem:[#allocation19_spill]] %s6113_s29  ;;  %p5338_p4 = por %p301_p2, %p300_p1 }
  0x14   : > { %s285_s14 = ssub.s32 %s5213_s25, %s6113_s29  ;;  %p3790_p6 = scmp.ge.s32.totalorder %s5217_s26, 1 }
  0x15   : > { %s6088_s13 = scalar_select %p5338_p4, 1, 0 }
  0x16   : > { %p288_p7 = scmp.eq.s32.totalorder %s285_s14, 0  ;;  %p5345_p8 = por %p307_p5, %p306_p3 }
  0x17   : > { %p342_p9 = scmp.lt.s32.totalorder %s5217_s26, 3  ;;  %p5357_p11 = scmp.eq.s32.totalorder %s3788_s27, 0 }
  0x18   : > { %s6089_s15 = scalar_select %p5345_p8, 1, 0 }
  0x19   : > { %s5351_s16 = scalar_select %p288_p7, %s5205_s23, %s290_s30  }
  0x1a   : > { %6090 = sst [smem:[#allocation20_spill]] %s6089_s15  ;;  %p5353_p10 = pnand %p3790_p6, %p342_p9 }
  0x1b   : > { %6091 = sst [smem:[#allocation21_spill]] %s5351_s16  ;;  %s5219_s19 = smov [#allocation5]  }
  0x1c   : > { %s6092_s17 = scalar_select %p5353_p10, 1, 0 }
  0x1d   : > { %s6093_s18 = scalar_select %p5357_p11, 1, 0 }
  0x1e   : > { %p4443_p12 = pneg %p5353_p10  ;;  %s370_s20 = sshll.u32 %s5219_s19, 4  ;;  %s371_s20 = int_to_ptr.vmem [resolvable:$true] %s370_s20 }
  0x1f   : > { %s5220_s30 = smov [#allocation2]   ;;  %s6095_s3 = sld [smem:[#allocation22_spill]] }
  0x20   : > { %p5365_p13 = pnand %p5357_p11, %p4443_p12  ;;  %s354_s14 = sshll.u32 %s5220_s30, 4  ;;  %s355_s14 = int_to_ptr.vmem [resolvable:$true] %s354_s14 }
  0x22   : > { %p5377_p1 = pneg %p5365_p13 }
  0x25   : > { %s5015_s27 = scalar_lea.hbm %s6095_s3, 3072 }
  0x26   : > { %p5016_p0 = scmp.ne.s32.totalorder %s6095_s3, %s5015_s27  ;;  %p5022_p5 = scmp.lt.u32.totalorder %s5015_s27, %s6095_s3 }
  0x28   : > { %p5018_p2 = pnand %p5377_p1, %p5016_p0 }
  0x2a   : > { %p5019_p3 = pneg %p5018_p2 }
  0x2c   : > { %p5024_p6 = pnand %p5022_p5, %p5019_p3 }
  0x2e   : > { %5027 = shalt.err (!%p5024_p6)
}
  0x2f   : > { %s5028_s25 = scalar_lea.vmem %s371_s20, 3072  ;;  %p5036_p8 = scmp.lt.s32.totalorder %s371_s20, %s371_s20 }
  0x30   : > { %p5029_p7 = scmp.ne.s32.totalorder %s371_s20, %s5028_s25  ;;  %p5037_p4 = scmp.lt.s32.totalorder %s5028_s25, %s5028_s25 }
  0x32   : > { %p5031_p9 = pnand %p5029_p7, %p5377_p1  ;;  %p5038_p11 = por %p5037_p4, %p5036_p8 }
  0x34   : > { %p5032_p12 = pneg %p5031_p9 }
  0x36   : > { %p5039_p10 = pnand %p5038_p11, %p5032_p12 }
  0x38   : > { %5042 = shalt.err (!%p5039_p10)
}
  0x39   : > { %s5221_s23 = smov 256   ;;  %s5222_s29 = smov 16  }
  0x3a   : > { %4449 = dma.hbm_to_vmem [thread:$0]  (!%p5365_p13), %s6095_s3, 3072, %s371_s20, [#allocation6], %s5221_s23, %s5221_s23, %s5222_s29  }
  0x3b   : > { %s5043_s27 = scalar_lea.hbm %s6055_s1, 1024 }
  0x3c   : > { %p5044_p4 = scmp.ne.s32.totalorder %s6055_s1, %s5043_s27  ;;  %p5050_p11 = scmp.lt.u32.totalorder %s5043_s27, %s6055_s1 }
  0x3e   : > { %p5046_p8 = pnand %p5044_p4, %p5377_p1 }
  0x40   : > { %p5047_p10 = pneg %p5046_p8 }
  0x42   : > { %p5052_p0 = pnand %p5050_p11, %p5047_p10 }
  0x44   : > { %5055 = shalt.err (!%p5052_p0)
}
  0x45   : > { %s5056_s21 = scalar_lea.vmem %s355_s14, 1024  ;;  %p5064_p6 = scmp.lt.s32.totalorder %s355_s14, %s355_s14 }
  0x46   : > { %p5057_p2 = scmp.ne.s32.totalorder %s355_s14, %s5056_s21  ;;  %p5065_p7 = scmp.lt.s32.totalorder %s5056_s21, %s5056_s21 }
  0x48   : > { %p5059_p3 = pnand %p5057_p2, %p5377_p1  ;;  %p5066_p9 = por %p5065_p7, %p5064_p6 }
  0x4a   : > { %p5060_p5 = pneg %p5059_p3 }
  0x4c   : > { %p5067_p12 = pnand %p5066_p9, %p5060_p5 }
  0x4e   : > { %5070 = shalt.err (!%p5067_p12)
}
  0x4f   : > { %s5223_s12 = smov 128   ;;  %s5224_s26 = smov 8  }
  0x50   : > { %4446 = dma.hbm_to_vmem [thread:$0]  (!%p5365_p13), %s6055_s1, 1024, %s355_s14, [#allocation3], %s5223_s12, %s5223_s12, %s5224_s26  }
  0x51   : > { %s5225_s23 = smov [#allocation7]   ;;  %s5071_s30 = scalar_lea.hbm %s6059_s5, 24576 }
  0x52   : > { %s386_s29 = sshll.u32 %s5225_s23, 4  ;;  %p5072_p4 = scmp.ne.s32.totalorder %s6059_s5, %s5071_s30  ;;  %s387_s29 = int_to_ptr.vmem [resolvable:$true] %s386_s29 }
  0x53   : > { %p5078_p11 = scmp.lt.u32.totalorder %s5071_s30, %s6059_s5 }
  0x54   : > { %p5074_p8 = pnand %p5072_p4, %p5377_p1 }
  0x56   : > { %p5075_p10 = pneg %p5074_p8 }
  0x58   : > { %p5080_p0 = pnand %p5078_p11, %p5075_p10 }
  0x5a   : > { %5083 = shalt.err (!%p5080_p0)
}
  0x5b   : > { %s5084_s14 = scalar_lea.vmem %s387_s29, 24576  ;;  %p5092_p6 = scmp.lt.s32.totalorder %s387_s29, %s387_s29 }
  0x5c   : > { %p5085_p2 = scmp.ne.s32.totalorder %s387_s29, %s5084_s14  ;;  %p5093_p7 = scmp.lt.s32.totalorder %s5084_s14, %s5084_s14 }
  0x5e   : > { %p5087_p3 = pnand %p5085_p2, %p5377_p1  ;;  %p5094_p9 = por %p5093_p7, %p5092_p6 }
  0x60   : > { %p5088_p5 = pneg %p5087_p3 }
  0x62   : > { %p5095_p12 = pnand %p5094_p9, %p5088_p5 }
  0x64   : > { %5098 = shalt.err (!%p5095_p12)
}
  0x65   : > { %4452 = dma.hbm_to_vmem [thread:$0]  (!%p5365_p13), %s6059_s5, 24576, %s387_s29, [#allocation6], %s5223_s12, %s5223_s12, %s5224_s26  }
  0x66   : > { %p6097_p4 = scmp.ne.s32.totalorder %s6092_s17, 0 }
  0x67   : > { %p6098_p8 = scmp.ne.s32.totalorder (!%p6097_p4), %s6093_s18, 0 }
  0x68   : > { %429 = sbr.rel (%p6097_p4) target bundleno = 2464 (0x9a0), region = 64 }
  0x6f   : > { %5180 = dma.done.wait (%p6098_p8), [#allocation3], 1024  }
  0x70   : > { %5182 = vsyncadd (%p6098_p8), [#allocation3], 4294966272 }
  0x71   : > { %5184 = dma.done.wait (%p6098_p8), [#allocation6], 27648  }
  0x72   : > { %5186 = vsyncadd (%p6098_p8), [#allocation6], 4294939648  ;;  %p488_p1 = scmp.lt.s32.totalorder %s5209_s24, 1  ;;  %v501_v0 = vld [vmem:[#allocation2] sm:$0xff]  ;;  %v502_v1 = vld [vmem:[#allocation2 + $0x8] sm:$0xff]  ;;  %vm509_vm0 = vcmask 523264   ;;  %v690_v62 = vlaneseq }
  0x73   : > { %v503_v2 = vld [vmem:[#allocation2 + $0x10] sm:$0xff]  ;;  %v4355_v3 = vpack.c.bf16 %v502_v1, %v501_v0  ;;  %v504_v4 = vld [vmem:[#allocation2 + $0x18] sm:$0xff]  ;;  %v505_v6 = vld [vmem:[#allocation2 + $0x20] sm:$0xff]  ;;  %s5228_s19 = smov 64   ;;  %vm723_vm3 = vcmask 261120   ;;  %vm894_vm4 = vcmask 785408  }
  0x74   : > { %s489_s3 = scalar_select %p488_p1, %s5209_s24, 1  ;;  %v4359_v5 = vpack.c.bf16 %v504_v4, %v503_v2  ;;  %v506_v7 = vld [vmem:[#allocation2 + $0x28] sm:$0xff]  ;;  %v593_v9 = vld [vmem:[%s6056_s2] sm:$0xff]  ;;  %v595_v12 = vld [vmem:[%s6056_s2 + $0x10] sm:$0xff]  ;;  %v5498_v1 = vshrl.u32 %v690_v62, 7  ;;  %vm999_vm5 = vcmask 1040384  }
  0x75   : > { %4356 = vmatprep.subr.bf16.mxu0 %v4355_v3  ;;  %v594_v10 = vld [vmem:[%s6056_s2 + $0x8] sm:$0xff]  ;;  %v596_v13 = vld [vmem:[%s6056_s2 + $0x18] sm:$0xff]  ;;  %v4363_v14 = vpack.c.bf16 %v506_v7, %v505_v6  ;;  %v597_v16 = vld [vmem:[%s6056_s2 + $0x20] sm:$0xff]  ;;  %vm1804_vm6 = vcmask 1041408   ;;  %vm5230_vm7 = vmmov 0   ;;  %s5828_s20 = sand.u32 1, %s5201_s22  }
  0x76   : > { %s4214_s28 = sshll.u32 %s489_s3, 4  ;;  %4358 = vmatpush3.bf16.msra.mxu0 %v4355_v3  ;;  %v4371_v11 = vpack.c.bf16 %v594_v10, %v593_v9  ;;  %v4375_v15 = vpack.c.bf16 %v596_v13, %v595_v12  ;;  %v598_v17 = vld [vmem:[%s6056_s2 + $0x28] sm:$0xff]  ;;  %v507_v18 = vld [vmem:[#allocation2 + $0x30] sm:$0xff]  ;;  %v508_v19 = vld [vmem:[#allocation2 + $0x38] sm:$0xff]  ;;  %v692_v4 = vadd.s32 8, %v5498_v1  ;;  %v5504_v6 = vadd.s32 4294967293, %v5498_v1 }
  0x77   : > { %s5444_s12 = scalar_lea.vmem %s6054_s0, %s4214_s28  ;;  %4360 = vmatprep.subr.bf16.mxu0 %v4359_v5  ;;  %v599_v20 = vld [vmem:[%s6056_s2 + $0x30] sm:$0xff]  ;;  %v600_v21 = vld [vmem:[%s6056_s2 + $0x38] sm:$0xff]  ;;  %v4379_v22 = vpack.c.bf16 %v598_v17, %v597_v16  ;;  %v4367_v23 = vpack.c.bf16 %v508_v19, %v507_v18  ;;  %v601_v24 = vld [vmem:[%s6056_s2 + $0x40] sm:$0xff]  ;;  %v5226_v17 = vmov 0   ;;  %s5227_s28 = smov 32   ;;  %v764_v62 = vsub.s32 2, %v5498_v1 }
  0x78   : > { %v499_v8 = vld [vmem:[%s5444_s12] sm:$0xff]  ;;  %4372 = vmatprep.subr.bf16.mxu1 %v4371_v11  ;;  %v602_v25 = vld [vmem:[%s6056_s2 + $0x48] sm:$0xff]  ;;  %v4383_v26 = vpack.c.bf16 %v600_v21, %v599_v20  ;;  %v603_v28 = vld [vmem:[%s6056_s2 + $0x50] sm:$0xff]  ;;  %vm697_vm2 = vcmp.ge.s32.totalorder %v5504_v6, 0  ;;  %s3799_s3 = sshll.u32 %s5828_s20, 3  ;;  %s4210_s26 = sshll.u32 %s5209_s24, 7 }
  0x79   : > { %4277 = vmatprep.mubr.msk.f32.mxu0 %vm509_vm0, %v499_v8  ;;  %4374 = vmatpush3.bf16.msra.mxu1 %v4371_v11  ;;  %v500_v27 = vld [vmem:[%s5444_s12 + $0x8] sm:$0x3f]  ;;  %v604_v29 = vld [vmem:[%s6056_s2 + $0x58] sm:$0xff]  ;;  %v4387_v30 = vpack.c.bf16 %v602_v25, %v601_v24  ;;  %v605_v31 = vld [vmem:[%s6056_s2 + $0x60] sm:$0xff]  ;;  %s5836_s17 = scalar_lea.vmem [#allocation8], %s3799_s3  ;;  %s6099_s15 = sld [smem:[#allocation23_spill]] }
  0x7a   : > { %4362 = vmatpush3.bf16.msra.mxu0 %v4359_v5  ;;  %4376 = vmatprep.subr.bf16.mxu1 %v4375_v15  ;;  %v606_v32 = vld [vmem:[%s6056_s2 + $0x68] sm:$0xff]  ;;  %v4391_v33 = vpack.c.bf16 %v604_v29, %v603_v28  ;;  %v607_v35 = vld [vmem:[%s6056_s2 + $0x70] sm:$0xff]  ;;  %v608_v36 = vld [vmem:[%s6056_s2 + $0x78] sm:$0xff]  ;;  %v5501_v5 = vadd.s32 4294967293, %v692_v4  ;;  %s3633_s30 = sshll.u32 %s5836_s17, 4  ;;  %s3614_s27 = scalar_lea.sflag [#allocation4], %s5828_s20  ;;  %s3634_s30 = int_to_ptr.vmem [resolvable:$true] %s3633_s30 }
  0x7b   : > { %4364 = vmatprep.subr.bf16.mxu0 %v4363_v14  ;;  %v4395_v34 = vpack.c.bf16 %v606_v32, %v605_v31  ;;  %v4399_v37 = vpack.c.bf16 %v608_v36, %v607_v35  ;;  %v4527_v42 = vld [vmem:[#allocation5] ss:$16 sps:$4 sm:$0xff]   ;;  %v4529_v43 = vld [vmem:[#allocation5 + $0x4] ss:$16 sps:$4 sm:$0xff]   ;;  %v4530_v44 = vld [vmem:[#allocation5 + $0x8] ss:$16 sps:$4 sm:$0xff]  }
  0x7c   : > { %v4532_v45 = vld [vmem:[#allocation5 + $0xc] ss:$16 sps:$4 sm:$0xff]   ;;  %v4535_v46 = vld [vmem:[#allocation5 + $0x24] ss:$16 sps:$4 sm:$0xff]   ;;  %v4533_v48 = vld [vmem:[#allocation5 + $0x20] ss:$16 sps:$4 sm:$0xff]  }
  0x7d   : > { %4378 = vmatpush3.bf16.msra.mxu1 %v4375_v15  ;;  %v4538_v47 = vld [vmem:[#allocation5 + $0x2c] ss:$16 sps:$4 sm:$0xff]   ;;  %v4536_v49 = vld [vmem:[#allocation5 + $0x28] ss:$16 sps:$4 sm:$0xff]   ;;  %v4541_v50 = vld [vmem:[#allocation5 + $0x44] ss:$16 sps:$4 sm:$0xff]  }
  0x7e   : > { %4366 = vmatpush3.bf16.msra.mxu0 %v4363_v14  ;;  %4380 = vmatprep.subr.bf16.mxu1 %v4379_v22  ;;  %v4544_v51 = vld [vmem:[#allocation5 + $0x4c] ss:$16 sps:$4 sm:$0xff]   ;;  %v4539_v52 = vld [vmem:[#allocation5 + $0x40] ss:$16 sps:$4 sm:$0xff]   ;;  %v4542_v53 = vld [vmem:[#allocation5 + $0x48] ss:$16 sps:$4 sm:$0xff]  }
  0x7f   : > { %4368 = vmatprep.subr.bf16.mxu0 %v4367_v23  ;;  %v4547_v54 = vld [vmem:[#allocation5 + $0x64] ss:$16 sps:$4 sm:$0xff]   ;;  %v4550_v55 = vld [vmem:[#allocation5 + $0x6c] ss:$16 sps:$4 sm:$0xff]   ;;  %v4545_v56 = vld [vmem:[#allocation5 + $0x60] ss:$16 sps:$4 sm:$0xff]   ;;  %s5975_s16 = scalar_lea.hbm %s6099_s15, %s4210_s26 }
  0x80   : > { %v4548_v57 = vld [vmem:[#allocation5 + $0x68] ss:$16 sps:$4 sm:$0xff]   ;;  %v4553_v58 = vld [vmem:[#allocation5 + $0x84] ss:$16 sps:$4 sm:$0xff]   ;;  %v4556_v59 = vld [vmem:[#allocation5 + $0x8c] ss:$16 sps:$4 sm:$0xff]  }
  0x81   : > { %4382 = vmatpush3.bf16.msra.mxu1 %v4379_v22  ;;  %v4551_v60 = vld [vmem:[#allocation5 + $0x80] ss:$16 sps:$4 sm:$0xff]   ;;  %v4554_v61 = vld [vmem:[#allocation5 + $0x88] ss:$16 sps:$4 sm:$0xff]   ;;  %v4559_v7 = vld [vmem:[#allocation5 + $0xa4] ss:$16 sps:$4 sm:$0xff]  }
  0x82   : > { %4370 = vmatpush3.bf16.msra.mxu0 %v4367_v23  ;;  %4384 = vmatprep.subr.bf16.mxu1 %v4383_v26  ;;  %v4562_v8 = vld [vmem:[#allocation5 + $0xac] ss:$16 sps:$4 sm:$0xff]   ;;  %vm700_vm1 = vcmp.lt.s32.totalorder %v5501_v5, 8  ;;  %v4557_v10 = vld [vmem:[#allocation5 + $0xa0] ss:$16 sps:$4 sm:$0xff]   ;;  %s5099_s25 = scalar_lea.vmem %s3634_s30, 128 }
  0x83   : > { %897 = vmatprep.subr.bf16.mxu0 %v4529_v43  ;;  %v4560_v11 = vld [vmem:[#allocation5 + $0xa8] ss:$16 sps:$4 sm:$0xff]   ;;  %v4565_v19 = vld [vmem:[#allocation7 + $0x4] ss:$8 sps:$4 sm:$0xff]   ;;  %v4568_v29 = vld [vmem:[#allocation7 + $0x14] ss:$8 sps:$4 sm:$0xff]   ;;  %p5100_p13 = scmp.ne.s32.totalorder %s3634_s30, %s5099_s25 }
  0x84   : > { %v4566_v31 = vld [vmem:[#allocation7 + $0x10] ss:$8 sps:$4 sm:$0xff]   ;;  %v4571_v32 = vld [vmem:[#allocation7 + $0x24] ss:$8 sps:$4 sm:$0xff]   ;;  %p6100_p10 = scmp.ne.s32.totalorder %s6088_s13, 0  ;;  %s5231_s12 = smov [#allocation8]  }
  0x85   : > { %4278 = vmatmul.mubr.msk.f32.vlgmr.msra.gmra.mrb[0].mxu0 %vm509_vm0, %v500_v27  ;;  %4386 = vmatpush3.bf16.msra.mxu1 %v4383_v26  ;;  %v4563_v26 = vld [vmem:[#allocation7] ss:$8 sps:$4 sm:$0xff]   ;;  %v4572_v35 = vld [vmem:[#allocation7 + $0x30] ss:$8 sps:$4 sm:$0xff]   ;;  %v4577_v36 = vld [vmem:[#allocation7 + $0x44] ss:$8 sps:$4 sm:$0xff]  }
  0x86   : > { %4388 = vmatprep.subr.bf16.mxu1 %v4387_v30  ;;  %898 = vmatpush1.bf16.msra.mxu0 %v4527_v42  ;;  %v4586_v42 = vld [vmem:[#allocation7 + $0x74] ss:$8 sps:$4 sm:$0xff]   ;;  %v4584_v43 = vld [vmem:[#allocation7 + $0x70] ss:$8 sps:$4 sm:$0xff]   ;;  %v4987_v6 = vld [vmem:[%s6061_s7 + $0x2a4] ss:$8 sps:$4 sm:$0xff]   ;;  %p5101_p11 = pnand %p5100_p13, %p6100_p10 }
  0x87   : > { %899 = vmatprep.subr.bf16.mxu0 %v4535_v46  ;;  %929 = vmatprep.mubr.bf16.mxu0 %v5226_v17  ;;  %v4592_v46 = vld [vmem:[#allocation7 + $0x94] ss:$8 sps:$4 sm:$0xff]   ;;  %v4982_v5 = vld [vmem:[%s6061_s7 + $0x290] ss:$8 sps:$4 sm:$0xff]   ;;  %s5103_s21 = sshll.u32 %s5231_s12, 4  ;;  %s5104_s21 = int_to_ptr.vmem [resolvable:$false] %s5103_s21 }
  0x88   : > { %p5102_p0 = pneg %p5101_p11  ;;  %s5105_s14 = scalar_lea.vmem %s5104_s21, 256 }
  0x89   : > { %4390 = vmatpush3.bf16.msra.mxu1 %v4387_v30  ;;  %p5106_p2 = scmp.lt.s32.totalorder %s3634_s30, %s5104_s21  ;;  %p5107_p3 = scmp.lt.s32.totalorder %s5105_s14, %s5099_s25 }
  0x8a   : > { %4392 = vmatprep.subr.bf16.mxu1 %v4391_v33  ;;  %900 = vmatpush1.bf16.msra.mxu0 %v4533_v48  ;;  %v4595_v48 = vld [vmem:[#allocation7 + $0xa4] ss:$8 sps:$4 sm:$0xff]  }
  0x8b   : > { %901 = vmatprep.subr.bf16.mxu0 %v4541_v50  ;;  %v4598_v50 = vld [vmem:[#allocation7 + $0xb4] ss:$8 sps:$4 sm:$0xff]   ;;  %p5108_p5 = por %p5107_p3, %p5106_p2 }
  0x8d   : > { %4394 = vmatpush3.bf16.msra.mxu1 %v4391_v33  ;;  %v4569_v33 = vld [vmem:[#allocation7 + $0x20] ss:$8 sps:$4 sm:$0xff]   ;;  %p5109_p6 = pnand %p5108_p5, %p5102_p0 }
  0x8e   : > { %4396 = vmatprep.subr.bf16.mxu1 %v4395_v34  ;;  %902 = vmatpush1.bf16.msra.mxu0 %v4539_v52  ;;  %v4601_v52 = vld [vmem:[#allocation7 + $0xc4] ss:$8 sps:$4 sm:$0xff]  }
  0x8f   : > { %903 = vmatprep.subr.bf16.mxu0 %v4547_v54  ;;  %v4604_v54 = vld [vmem:[#allocation7 + $0xd4] ss:$8 sps:$4 sm:$0xff]  }
  0x91   : > { %4398 = vmatpush3.bf16.msra.mxu1 %v4395_v34  ;;  %v4574_v34 = vld [vmem:[#allocation7 + $0x34] ss:$8 sps:$4 sm:$0xff]  }
  0x92   : > { %4400 = vmatprep.subr.bf16.mxu1 %v4399_v37  ;;  %904 = vmatpush1.bf16.msra.mxu0 %v4545_v56  ;;  %v4607_v56 = vld [vmem:[#allocation7 + $0xe4] ss:$8 sps:$4 sm:$0xff]  }
  0x93   : > { %905 = vmatprep.subr.bf16.mxu0 %v4553_v58  ;;  %v4610_v58 = vld [vmem:[#allocation7 + $0xf4] ss:$8 sps:$4 sm:$0xff]  }
  0x95   : > { %4402 = vmatpush3.bf16.msra.mxu1 %v4399_v37  ;;  %v4575_v37 = vld [vmem:[#allocation7 + $0x40] ss:$8 sps:$4 sm:$0xff]  }
  0x96   : > { %940 = vmatprep.subr.bf16.mxu1 %v4532_v45  ;;  %906 = vmatpush1.bf16.msra.mxu0 %v4551_v60  ;;  %v4587_v45 = vld [vmem:[#allocation7 + $0x80] ss:$8 sps:$4 sm:$0xff]   ;;  %v4613_v60 = vld [vmem:[#allocation7 + $0x104] ss:$8 sps:$4 sm:$0xff]  }
  0x97   : > { %907 = vmatprep.subr.bf16.mxu0 %v4559_v7 }
  0x9a   : > { %908 = vmatpush1.bf16.msra.mxu0 %v4557_v10 }
  0x9b   : > { %1660 = vmatprep.subr.bf16.mxu0 %v4565_v19 }
 0x158   : > { %v4279_v38 = vpop.f32.mrb[0].mxu0 }
 0x159   : > { %v582_v39 = vpop.f32.mrb[1].mxu0  ;;  %v592_v41 = vmul.f32 %v4279_v38, %v4279_v38  ;;  %v4580_v38 = vld [vmem:[#allocation7 + $0x54] ss:$8 sps:$4 sm:$0xff]  }
 0x15a   : > { %v591_v40 = vmul.f32 %v582_v39, %v582_v39  ;;  %v4578_v39 = vld [vmem:[#allocation7 + $0x50] ss:$8 sps:$4 sm:$0xff]  }
 0x15c   : > { %4312 = vmatprep.mubr.f32.mxu1 %v591_v40  ;;  %v4583_v40 = vld [vmem:[#allocation7 + $0x64] ss:$8 sps:$4 sm:$0xff]  }
 0x15d   : > { %4313 = vmatmul.mubr.f32.vlgmr.msra.gmra.mrb[0].mxu1 %v592_v41  ;;  %v4581_v41 = vld [vmem:[#allocation7 + $0x60] ss:$8 sps:$4 sm:$0xff]  }
 0x15e   : > { %941 = vmatpush1.bf16.msra.mxu1 %v4530_v44  ;;  %972 = vmatprep.mubr.bf16.mxu1 %v5226_v17  ;;  %v4589_v44 = vld [vmem:[#allocation7 + $0x84] ss:$8 sps:$4 sm:$0xff]  }
 0x15f   : > { %942 = vmatprep.subr.bf16.mxu1 %v4538_v47  ;;  %v4590_v47 = vld [vmem:[#allocation7 + $0x90] ss:$8 sps:$4 sm:$0xff]  }
 0x162   : > { %943 = vmatpush1.bf16.msra.mxu1 %v4536_v49  ;;  %v4593_v49 = vld [vmem:[#allocation7 + $0xa0] ss:$8 sps:$4 sm:$0xff]  }
 0x163   : > { %944 = vmatprep.subr.bf16.mxu1 %v4544_v51  ;;  %v4596_v51 = vld [vmem:[#allocation7 + $0xb0] ss:$8 sps:$4 sm:$0xff]  }
 0x166   : > { %945 = vmatpush1.bf16.msra.mxu1 %v4542_v53  ;;  %v4599_v53 = vld [vmem:[#allocation7 + $0xc0] ss:$8 sps:$4 sm:$0xff]  }
 0x167   : > { %946 = vmatprep.subr.bf16.mxu1 %v4550_v55  ;;  %v4602_v55 = vld [vmem:[#allocation7 + $0xd0] ss:$8 sps:$4 sm:$0xff]  }
 0x16a   : > { %947 = vmatpush1.bf16.msra.mxu1 %v4548_v57  ;;  %v4605_v57 = vld [vmem:[#allocation7 + $0xe0] ss:$8 sps:$4 sm:$0xff]  }
 0x16b   : > { %948 = vmatprep.subr.bf16.mxu1 %v4556_v59  ;;  %v4608_v59 = vld [vmem:[#allocation7 + $0xf0] ss:$8 sps:$4 sm:$0xff]  }
 0x16e   : > { %949 = vmatpush1.bf16.msra.mxu1 %v4554_v61  ;;  %v756_v61 = vsub.s32 0, %v5498_v1 }
 0x16f   : > { %950 = vmatprep.subr.bf16.mxu1 %v4562_v8 }
 0x172   : > { %951 = vmatpush1.bf16.msra.mxu1 %v4560_v11 }
 0x230   : > { %v4314_v63 = vpop.f32.mrb[0].mxu1 }
 0x231   : > { %v685_v0 = vmax.f32 %v4314_v63, 1e-09  ;;  %v675_v2 = vpop.f32.mrb[1].mxu1  ;;  %v752_v63 = vld [vmem:[%s6058_s4] sm:$0xf] }
 0x232   : > { %v684_v3 = vmax.f32 %v675_v2, 1e-09  ;;  %v768_v2 = vsub.s32 3, %v5498_v1  ;;  %v765_v4 = vrot.slane %v752_v63, %v764_v62 }
 0x233   : > { %5011 = vlog2.f32 %v685_v0  ;;  %v760_v0 = vsub.s32 1, %v5498_v1 }
 0x234   : > { %5013 = vlog2.f32 %v684_v3  ;;  %v757_v3 = vrot.slane %v752_v63, %v756_v61  ;;  %v769_v8 = vrot.slane %v752_v63, %v768_v2 }
 0x235   : > { %v761_v7 = vrot.slane %v752_v63, %v760_v0  ;;  %v4611_v0 = vld [vmem:[#allocation7 + $0x100] ss:$8 sps:$4 sm:$0xff]  }
 0x23d   : > { %v5012_v9 = vpop.eup %5011 }
 0x23e   : > { %v5014_v12 = vpop.eup %5013  ;;  %v689_v13 = vmul.f32 0.6931472, %v5012_v9 }
 0x23f   : > { %v687_v14 = vmul.f32 0.6931472, %v5014_v12 }
 0x240   : > { %v708_v15 = vsel %vm700_vm1, %v689_v13, 0.0 }
 0x241   : > { %v707_v16 = vsel %vm697_vm2, %v687_v14, 0.0 }
 0x242   : > { %v709_v18 = vpack.c.bf16 %v708_v15, %v707_v16 }
 0x244   : > { %v713_v20 = vshll.u32 %v709_v18, 16  ;;  %v711_v21 = vshrl.u32 %v709_v18, 16  ;;  %v720_v24 = vrot.slane %v709_v18, 1 }
 0x246   : > { %v715_v22 = vrot.slane %v713_v20, 1 }
 0x248   : > { %v716_v23 = vor.u32 %v715_v22, %v711_v21 }
 0x24a   : > { %717 = vrot.lane.b32.xlu0 %v716_v23, %s5227_s28 }
 0x24e   : > { %721 = vrot.lane.b32.xlu0 %v720_v24, %s5228_s19 }
 0x2bc   : > { %v718_v25 = vpop.permute.xlu0 %717 }
 0x2bd   : > { %v725_v27 = vsel %vm723_vm3, %v709_v18, %v718_v25 }
 0x2c0   : > { %v722_v28 = vpop.permute.xlu0 %721 }
 0x2c1   : > { %v727_v30 = vsel %vm509_vm0, %v725_v27, %v722_v28 }
 0x2c2   : > { %3829 = vmatmul.mubr.msk.bf16.vlgmr.msra.gmra.mrb[4].mxu0 %vm894_vm4, %v727_v30  ;;  %3830 = vmatmul.mubr.msk.bf16.vlgmr.msra.gmra.mrb[4].mxu1 %vm894_vm4, %v727_v30 }
 0x2c3   : > { %1661 = vmatpush1.bf16.msra.mxu0 %v4563_v26 }
 0x2c4   : > { %1662 = vmatprep.subr.bf16.mxu0 %v4568_v29 }
 0x2c7   : > { %1663 = vmatpush1.bf16.msra.mxu0 %v4566_v31 }
 0x2c8   : > { %1664 = vmatprep.subr.bf16.mxu0 %v4571_v32 }
 0x2cb   : > { %1665 = vmatpush1.bf16.msra.mxu0 %v4569_v33 }
 0x2cc   : > { %1666 = vmatprep.subr.bf16.mxu0 %v4574_v34 }
 0x2cf   : > { %1667 = vmatpush1.bf16.msra.mxu0 %v4572_v35 }
 0x2d0   : > { %1668 = vmatprep.subr.bf16.mxu0 %v4577_v36 }
 0x2d3   : > { %1669 = vmatpush1.bf16.msra.mxu0 %v4575_v37 }
 0x2d4   : > { %1670 = vmatprep.subr.bf16.mxu0 %v4580_v38 }
 0x2d7   : > { %1671 = vmatpush1.bf16.msra.mxu0 %v4578_v39 }
 0x2d8   : > { %1672 = vmatprep.subr.bf16.mxu0 %v4583_v40 }
 0x2db   : > { %1673 = vmatpush1.bf16.msra.mxu0 %v4581_v41 }
 0x2dc   : > { %1674 = vmatprep.subr.bf16.mxu0 %v4586_v42 }
 0x2df   : > { %1675 = vmatpush1.bf16.msra.mxu0 %v4584_v43 }
 0x2e0   : > { %1676 = vmatprep.subr.bf16.mxu0 %v4589_v44 }
 0x2e3   : > { %1677 = vmatpush1.bf16.msra.mxu0 %v4587_v45 }
 0x2e4   : > { %1678 = vmatprep.subr.bf16.mxu0 %v4592_v46 }
 0x2e7   : > { %1679 = vmatpush1.bf16.msra.mxu0 %v4590_v47 }
 0x2e8   : > { %1680 = vmatprep.subr.bf16.mxu0 %v4595_v48 }
 0x2eb   : > { %1681 = vmatpush1.bf16.msra.mxu0 %v4593_v49 }
 0x2ec   : > { %1682 = vmatprep.subr.bf16.mxu0 %v4598_v50 }
 0x2ef   : > { %1683 = vmatpush1.bf16.msra.mxu0 %v4596_v51 }
 0x2f0   : > { %1684 = vmatprep.subr.bf16.mxu0 %v4601_v52 }
 0x2f3   : > { %1685 = vmatpush1.bf16.msra.mxu0 %v4599_v53 }
 0x2f4   : > { %1686 = vmatprep.subr.bf16.mxu0 %v4604_v54 }
 0x2f7   : > { %1687 = vmatpush1.bf16.msra.mxu0 %v4602_v55 }
 0x2f8   : > { %1688 = vmatprep.subr.bf16.mxu0 %v4607_v56 }
 0x2fb   : > { %1689 = vmatpush1.bf16.msra.mxu0 %v4605_v57 }
 0x2fc   : > { %1690 = vmatprep.subr.bf16.mxu0 %v4610_v58 }
 0x2ff   : > { %1691 = vmatpush1.bf16.msra.mxu0 %v4608_v59 }
 0x300   : > { %1703 = vmatprep.subr.bf16.mxu0 %v4613_v60 }
 0x395   : > { %v931_v9 = vpop.f32.mrb[4].mxu0  ;;  %v974_v10 = vpop.f32.mrb[4].mxu1 }
 0x396   : > { %v932_v11 = vadd.f32 %v931_v9, %v757_v3  ;;  %v975_v12 = vadd.f32 %v974_v10, %v765_v4  ;;  %v933_v13 = vpop.f32.mrb[5].mxu0  ;;  %v976_v14 = vpop.f32.mrb[5].mxu1  ;;  %v4614_v9 = vld [vmem:[#allocation7 + $0x110] ss:$8 sps:$4 sm:$0xff]  }
 0x397   : > { %v934_v15 = vadd.f32 %v933_v13, %v761_v7  ;;  %v977_v16 = vadd.f32 %v976_v14, %v769_v8  ;;  %v935_v18 = vpop.f32.mrb[6].mxu0  ;;  %v978_v19 = vpop.f32.mrb[6].mxu1  ;;  %v4619_v13 = vld [vmem:[#allocation7 + $0x124] ss:$8 sps:$4 sm:$0xff]  }
 0x398   : > { %v983_v20 = vmax.f32 %v932_v11, 0.0  ;;  %v985_v21 = vmax.f32 %v975_v12, 0.0  ;;  %v936_v22 = vadd.f32 %v935_v18, %v757_v3  ;;  %v979_v23 = vadd.f32 %v978_v19, %v765_v4  ;;  %v937_v1 = vpop.f32.mrb[7].mxu0  ;;  %v980_v24 = vpop.f32.mrb[7].mxu1  ;;  %v4616_v3 = vld [vmem:[#allocation7 + $0x114] ss:$8 sps:$4 sm:$0xff]  }
 0x399   : > { %v984_v25 = vmax.f32 %v934_v15, 0.0  ;;  %v986_v26 = vmax.f32 %v977_v16, 0.0  ;;  %v938_v27 = vadd.f32 %v937_v1, %v761_v7  ;;  %v981_v28 = vadd.f32 %v980_v24, %v769_v8  ;;  %v4707_v7 = vld [vmem:[%s6061_s7] ss:$8 sps:$4 sm:$0xff]   ;;  %v4709_v8 = vld [vmem:[%s6061_s7 + $0x4] ss:$8 sps:$4 sm:$0xff]  }
 0x39a   : > { %v1000_v29 = vrot.slane %v983_v20, 7  ;;  %v1002_v30 = vrot.slane %v985_v21, 7  ;;  %v987_v31 = vmax.f32 %v936_v22, 0.0  ;;  %v989_v32 = vmax.f32 %v979_v23, 0.0  ;;  %v4712_v12 = vld [vmem:[%s6061_s7 + $0x14] ss:$8 sps:$4 sm:$0xff]   ;;  %2115 = vmatprep.subr.bf16.mxu1 %v4709_v8 }
 0x39b   : > { %v1001_v33 = vrot.slane %v984_v25, 7  ;;  %v1003_v34 = vrot.slane %v986_v26, 7  ;;  %v988_v35 = vmax.f32 %v938_v27, 0.0  ;;  %v990_v36 = vmax.f32 %v981_v28, 0.0  ;;  %2116 = vmatpush1.bf16.msra.mxu1 %v4707_v7  ;;  %v4710_v15 = vld [vmem:[%s6061_s7 + $0x10] ss:$8 sps:$4 sm:$0xff]  }
 0x39c   : > { %v1004_v37 = vrot.slane %v987_v31, 7  ;;  %v1008_v38 = vrot.slane %v989_v32, 7  ;;  %v1020_v39 = vsel %vm697_vm2, %v1000_v29, 0.0  ;;  %v1022_v40 = vsel %vm697_vm2, %v1002_v30, 0.0  ;;  %2117 = vmatprep.subr.bf16.mxu1 %v4712_v12  ;;  %v4715_v16 = vld [vmem:[%s6061_s7 + $0x24] ss:$8 sps:$4 sm:$0xff]  }
 0x39d   : > { %v1006_v41 = vrot.slane %v988_v35, 7  ;;  %v1010_v42 = vrot.slane %v990_v36, 7  ;;  %v1021_v43 = vsel %vm697_vm2, %v1001_v33, 0.0  ;;  %v1023_v44 = vsel %vm697_vm2, %v1003_v34, 0.0  ;;  %v4617_v18 = vld [vmem:[#allocation7 + $0x120] ss:$8 sps:$4 sm:$0xff]  }
 0x39e   : > { %v1005_v45 = vsel %vm999_vm5, %v1000_v29, %v1004_v37  ;;  %v1009_v46 = vsel %vm999_vm5, %v1002_v30, %v1008_v38  ;;  %v4622_v19 = vld [vmem:[#allocation7 + $0x134] ss:$8 sps:$4 sm:$0xff]   ;;  %v4713_v20 = vld [vmem:[%s6061_s7 + $0x20] ss:$8 sps:$4 sm:$0xff]   ;;  %v4620_v22 = vld [vmem:[#allocation7 + $0x130] ss:$8 sps:$4 sm:$0xff]  }
 0x39f   : > { %v1024_v47 = vsel %vm700_vm1, %v1005_v45, 0.0  ;;  %v1026_v48 = vsel %vm700_vm1, %v1009_v46, 0.0  ;;  %v1007_v49 = vsel %vm999_vm5, %v1001_v33, %v1006_v41  ;;  %v1011_v50 = vsel %vm999_vm5, %v1003_v34, %v1010_v42  ;;  %2118 = vmatpush1.bf16.msra.mxu1 %v4710_v15  ;;  %v4718_v21 = vld [vmem:[%s6061_s7 + $0x34] ss:$8 sps:$4 sm:$0xff]   ;;  %v4625_v23 = vld [vmem:[#allocation7 + $0x144] ss:$8 sps:$4 sm:$0xff]  }
 0x3a0   : > { %v5538_v51 = vpack.c.bf16 %v1024_v47, %v1020_v39  ;;  %v5540_v52 = vpack.c.bf16 %v1026_v48, %v1022_v40  ;;  %v1025_v53 = vsel %vm700_vm1, %v1007_v49, 0.0  ;;  %v1027_v54 = vsel %vm700_vm1, %v1011_v50, 0.0  ;;  %2119 = vmatprep.subr.bf16.mxu1 %v4715_v16  ;;  %v4716_v1 = vld [vmem:[%s6061_s7 + $0x30] ss:$8 sps:$4 sm:$0xff]   ;;  %v4721_v24 = vld [vmem:[%s6061_s7 + $0x44] ss:$8 sps:$4 sm:$0xff]  }
 0x3a1   : > { %v5546_v55 = vpack.c.bf16 %v1025_v53, %v1021_v43  ;;  %v5548_v56 = vpack.c.bf16 %v1027_v54, %v1023_v44  ;;  %v4623_v25 = vld [vmem:[#allocation7 + $0x140] ss:$8 sps:$4 sm:$0xff]   ;;  %v4628_v26 = vld [vmem:[#allocation7 + $0x154] ss:$8 sps:$4 sm:$0xff]   ;;  %v4626_v29 = vld [vmem:[#allocation7 + $0x150] ss:$8 sps:$4 sm:$0xff]  }
 0x3a2   : > { %v1035_v57 = vshll.u32 %v5538_v51, 16  ;;  %v1033_v62 = vshrl.u32 %v5538_v51, 16  ;;  %v4719_v27 = vld [vmem:[%s6061_s7 + $0x40] ss:$8 sps:$4 sm:$0xff]   ;;  %v4724_v28 = vld [vmem:[%s6061_s7 + $0x54] ss:$8 sps:$4 sm:$0xff]  }
 0x3a3   : > { %v1042_v58 = vshll.u32 %v5546_v55, 16  ;;  %v1040_v60 = vshrl.u32 %v5546_v55, 16  ;;  %2120 = vmatpush1.bf16.msra.mxu1 %v4713_v20  ;;  %v4631_v30 = vld [vmem:[#allocation7 + $0x164] ss:$8 sps:$4 sm:$0xff]   ;;  %v4722_v31 = vld [vmem:[%s6061_s7 + $0x50] ss:$8 sps:$4 sm:$0xff]  }
 0x3a4   : > { %v1037_v59 = vrot.slane %v1035_v57, 1  ;;  %2121 = vmatprep.subr.bf16.mxu1 %v4718_v21  ;;  %v4727_v32 = vld [vmem:[%s6061_s7 + $0x64] ss:$8 sps:$4 sm:$0xff]   ;;  %v4629_v33 = vld [vmem:[#allocation7 + $0x160] ss:$8 sps:$4 sm:$0xff]  }
 0x3a5   : > { %v1044_v61 = vrot.slane %v1042_v58, 1  ;;  %v4634_v34 = vld [vmem:[#allocation7 + $0x174] ss:$8 sps:$4 sm:$0xff]   ;;  %v4725_v35 = vld [vmem:[%s6061_s7 + $0x60] ss:$8 sps:$4 sm:$0xff]  }
 0x3a6   : > { %v5554_v2 = vor.u32 %v1037_v59, %v1033_v62  ;;  %v4730_v36 = vld [vmem:[%s6061_s7 + $0x74] ss:$8 sps:$4 sm:$0xff]   ;;  %v4632_v37 = vld [vmem:[#allocation7 + $0x170] ss:$8 sps:$4 sm:$0xff]   ;;  %v4637_v38 = vld [vmem:[#allocation7 + $0x184] ss:$8 sps:$4 sm:$0xff]  }
 0x3a7   : > { %v1045_v63 = vor.u32 %v1044_v61, %v1040_v60  ;;  %2122 = vmatpush1.bf16.msra.mxu1 %v4716_v1  ;;  %v4728_v39 = vld [vmem:[%s6061_s7 + $0x70] ss:$8 sps:$4 sm:$0xff]   ;;  %v4733_v40 = vld [vmem:[%s6061_s7 + $0x84] ss:$8 sps:$4 sm:$0xff]   ;;  %v4635_v41 = vld [vmem:[#allocation7 + $0x180] ss:$8 sps:$4 sm:$0xff]  }
 0x3a8   : > { %2123 = vmatprep.subr.bf16.mxu1 %v4721_v24  ;;  %v4640_v42 = vld [vmem:[#allocation7 + $0x194] ss:$8 sps:$4 sm:$0xff]   ;;  %v4731_v43 = vld [vmem:[%s6061_s7 + $0x80] ss:$8 sps:$4 sm:$0xff]   ;;  %v4638_v45 = vld [vmem:[#allocation7 + $0x190] ss:$8 sps:$4 sm:$0xff]  }
 0x3a9   : > { %1692 = vmatprep.mubr.bf16.mxu0 %v1045_v63  ;;  %v1156_v4 = vshll.u32 %v1045_v63, 16  ;;  %v1154_v10 = vshrl.u32 %v1045_v63, 16  ;;  %v4736_v44 = vld [vmem:[%s6061_s7 + $0x94] ss:$8 sps:$4 sm:$0xff]   ;;  %v4643_v46 = vld [vmem:[#allocation7 + $0x1a4] ss:$8 sps:$4 sm:$0xff]  }
 0x3aa   : > { %1693 = vmatmul.mubr.bf16.vlgmr.msra.gmra.mrb[8].mxu0 %v5554_v2  ;;  %v4734_v47 = vld [vmem:[%s6061_s7 + $0x90] ss:$8 sps:$4 sm:$0xff]   ;;  %v4641_v48 = vld [vmem:[#allocation7 + $0x1a0] ss:$8 sps:$4 sm:$0xff]   ;;  %v4646_v49 = vld [vmem:[#allocation7 + $0x1b4] ss:$8 sps:$4 sm:$0xff]  }
 0x3ab   : > { %1704 = vmatpush1.bf16.msra.mxu0 %v4611_v0  ;;  %v1158_v11 = vrot.slane %v1156_v4, 1  ;;  %2124 = vmatpush1.bf16.msra.mxu1 %v4719_v27  ;;  %v4644_v50 = vld [vmem:[#allocation7 + $0x1b0] ss:$8 sps:$4 sm:$0xff]   ;;  %v4649_v53 = vld [vmem:[#allocation7 + $0x1c4] ss:$8 sps:$4 sm:$0xff]   ;;  %v1049_v60 = vrot.slane %v5546_v55, 1 }
 0x3ac   : > { %1705 = vmatprep.subr.bf16.mxu0 %v4616_v3  ;;  %2125 = vmatprep.subr.bf16.mxu1 %v4724_v28  ;;  %v4647_v54 = vld [vmem:[#allocation7 + $0x1c0] ss:$8 sps:$4 sm:$0xff]   ;;  %v4652_v57 = vld [vmem:[#allocation7 + $0x1d4] ss:$8 sps:$4 sm:$0xff]   ;;  %v4650_v58 = vld [vmem:[#allocation7 + $0x1d0] ss:$8 sps:$4 sm:$0xff]  }
 0x3ad   : > { %v1159_v14 = vor.u32 %v1158_v11, %v1154_v10  ;;  %v4655_v59 = vld [vmem:[#allocation7 + $0x1e4] ss:$8 sps:$4 sm:$0xff]   ;;  %v4653_v61 = vld [vmem:[#allocation7 + $0x1e0] ss:$8 sps:$4 sm:$0xff]   ;;  %v4658_v62 = vld [vmem:[#allocation7 + $0x1f4] ss:$8 sps:$4 sm:$0xff]  }
 0x3ae   : > { %v1149_v63 = vshll.u32 %v5554_v2, 16  ;;  %v1170_v0 = vshll.u32 %v1049_v60, 16  ;;  %v4656_v3 = vld [vmem:[#allocation7 + $0x1f0] ss:$8 sps:$4 sm:$0xff]   ;;  %v4661_v7 = vld [vmem:[#allocation7 + $0x204] ss:$8 sps:$4 sm:$0xff]  }
 0x3af   : > { %1706 = vmatpush1.bf16.msra.mxu0 %v4614_v9  ;;  %1735 = vmatprep.mubr.bf16.mxu0 %v1159_v14  ;;  %v1147_v9 = vshrl.u32 %v5554_v2, 16  ;;  %v4659_v10 = vld [vmem:[#allocation7 + $0x200] ss:$8 sps:$4 sm:$0xff]   ;;  %v1168_v11 = vshrl.u32 %v1049_v60, 16  ;;  %v4664_v55 = vld [vmem:[#allocation7 + $0x214] ss:$8 sps:$4 sm:$0xff]  }
 0x3b0   : > { %1707 = vmatprep.subr.bf16.mxu0 %v4619_v13  ;;  %2126 = vmatpush1.bf16.msra.mxu1 %v4722_v31  ;;  %v1151_v4 = vrot.slane %v1149_v63, 1  ;;  %v1172_v8 = vrot.slane %v1170_v0, 1  ;;  %v4662_v14 = vld [vmem:[#allocation7 + $0x210] ss:$8 sps:$4 sm:$0xff]   ;;  %v4667_v15 = vld [vmem:[#allocation7 + $0x224] ss:$8 sps:$4 sm:$0xff]  }
 0x3b1   : > { %2127 = vmatprep.subr.bf16.mxu1 %v4727_v32  ;;  %v4665_v16 = vld [vmem:[#allocation7 + $0x220] ss:$8 sps:$4 sm:$0xff]   ;;  %v4673_v2 = vld [vmem:[#allocation7 + $0x244] ss:$8 sps:$4 sm:$0xff]   ;;  %v4676_v21 = vld [vmem:[#allocation7 + $0x254] ss:$8 sps:$4 sm:$0xff]  }
 0x3b2   : > { %v1152_v12 = vor.u32 %v1151_v4, %v1147_v9  ;;  %v1173_v13 = vor.u32 %v1172_v8, %v1168_v11  ;;  %v4671_v20 = vld [vmem:[#allocation7 + $0x240] ss:$8 sps:$4 sm:$0xff]   ;;  %v4682_v24 = vld [vmem:[#allocation7 + $0x274] ss:$8 sps:$4 sm:$0xff]  }
 0x3b3   : > { %1708 = vmatpush1.bf16.msra.mxu0 %v4617_v18  ;;  %v4670_v18 = vld [vmem:[#allocation7 + $0x234] ss:$8 sps:$4 sm:$0xff]   ;;  %v4677_v1 = vld [vmem:[#allocation7 + $0x260] ss:$8 sps:$4 sm:$0xff]  }
 0x3b4   : > { %1709 = vmatprep.subr.bf16.mxu0 %v4622_v19  ;;  %2128 = vmatpush1.bf16.msra.mxu1 %v4725_v35  ;;  %v4668_v19 = vld [vmem:[#allocation7 + $0x230] ss:$8 sps:$4 sm:$0xff]   ;;  %v4683_v27 = vld [vmem:[#allocation7 + $0x280] ss:$8 sps:$4 sm:$0xff]   ;;  %v4688_v28 = vld [vmem:[#allocation7 + $0x294] ss:$8 sps:$4 sm:$0xff]  }
 0x3b5   : > { %2129 = vmatprep.subr.bf16.mxu1 %v4730_v36  ;;  %v4689_v31 = vld [vmem:[#allocation7 + $0x2a0] ss:$8 sps:$4 sm:$0xff]   ;;  %v4694_v32 = vld [vmem:[#allocation7 + $0x2b4] ss:$8 sps:$4 sm:$0xff]  }
 0x3b6   : > { %v4695_v35 = vld [vmem:[#allocation7 + $0x2c0] ss:$8 sps:$4 sm:$0xff]   ;;  %v4700_v36 = vld [vmem:[#allocation7 + $0x2d4] ss:$8 sps:$4 sm:$0xff]  }
 0x3b7   : > { %1710 = vmatpush1.bf16.msra.mxu0 %v4620_v22  ;;  %v4674_v22 = vld [vmem:[#allocation7 + $0x250] ss:$8 sps:$4 sm:$0xff]   ;;  %v4754_v60 = vld [vmem:[%s6061_s7 + $0xf4] ss:$8 sps:$4 sm:$0xff]  }
 0x3b8   : > { %1711 = vmatprep.subr.bf16.mxu0 %v4625_v23  ;;  %2130 = vmatpush1.bf16.msra.mxu1 %v4728_v39  ;;  %v4679_v23 = vld [vmem:[#allocation7 + $0x264] ss:$8 sps:$4 sm:$0xff]   ;;  %v1048_v39 = vrot.slane %v5538_v51, 1  ;;  %v4737_v51 = vld [vmem:[%s6061_s7 + $0xa0] ss:$8 sps:$4 sm:$0xff]  }
 0x3b9   : > { %2131 = vmatprep.subr.bf16.mxu1 %v4733_v40  ;;  %v4701_v40 = vld [vmem:[#allocation7 + $0x2e0] ss:$8 sps:$4 sm:$0xff]  }
 0x3bb   : > { %1712 = vmatpush1.bf16.msra.mxu0 %v4623_v25  ;;  %v4680_v25 = vld [vmem:[#allocation7 + $0x270] ss:$8 sps:$4 sm:$0xff]  }
 0x3bc   : > { %1713 = vmatprep.subr.bf16.mxu0 %v4628_v26  ;;  %2132 = vmatpush1.bf16.msra.mxu1 %v4731_v43  ;;  %v4685_v26 = vld [vmem:[#allocation7 + $0x284] ss:$8 sps:$4 sm:$0xff]   ;;  %v4704_v43 = vld [vmem:[#allocation7 + $0x2f0] ss:$8 sps:$4 sm:$0xff]  }
 0x3bd   : > { %2133 = vmatprep.subr.bf16.mxu1 %v4736_v44 }
 0x3bf   : > { %1714 = vmatpush1.bf16.msra.mxu0 %v4626_v29  ;;  %v4686_v29 = vld [vmem:[#allocation7 + $0x290] ss:$8 sps:$4 sm:$0xff]  }
 0x3c0   : > { %1715 = vmatprep.subr.bf16.mxu0 %v4631_v30  ;;  %2134 = vmatpush1.bf16.msra.mxu1 %v4734_v47  ;;  %v4691_v30 = vld [vmem:[#allocation7 + $0x2a4] ss:$8 sps:$4 sm:$0xff]  }
 0x3c1   : > { %v4739_v47 = vld [vmem:[%s6061_s7 + $0xa4] ss:$8 sps:$4 sm:$0xff]  }
 0x3c2   : > { %2135 = vmatprep.subr.bf16.mxu1 %v4739_v47  ;;  %v4785_v47 = vld [vmem:[%s6063_s9 + $0x30] sm:$0xff]  }
 0x3c3   : > { %1716 = vmatpush1.bf16.msra.mxu0 %v4629_v33  ;;  %v4692_v33 = vld [vmem:[#allocation7 + $0x2b0] ss:$8 sps:$4 sm:$0xff]  }
 0x3c4   : > { %1717 = vmatprep.subr.bf16.mxu0 %v4634_v34  ;;  %v4697_v34 = vld [vmem:[#allocation7 + $0x2c4] ss:$8 sps:$4 sm:$0xff]   ;;  %2136 = vmatpush1.bf16.msra.mxu1 %v4737_v51  ;;  %v4786_v51 = vld [vmem:[%s6063_s9 + $0x38] sm:$0xff]  }
 0x3c7   : > { %1718 = vmatpush1.bf16.msra.mxu0 %v4632_v37  ;;  %v4698_v37 = vld [vmem:[#allocation7 + $0x2d0] ss:$8 sps:$4 sm:$0xff]  }
 0x3c8   : > { %1719 = vmatprep.subr.bf16.mxu0 %v4637_v38  ;;  %v4703_v38 = vld [vmem:[#allocation7 + $0x2e4] ss:$8 sps:$4 sm:$0xff]  }
 0x3cb   : > { %1720 = vmatpush1.bf16.msra.mxu0 %v4635_v41  ;;  %v4706_v41 = vld [vmem:[#allocation7 + $0x2f4] ss:$8 sps:$4 sm:$0xff]  }
 0x3cc   : > { %1721 = vmatprep.subr.bf16.mxu0 %v4640_v42  ;;  %v1163_v42 = vshll.u32 %v1048_v39, 16 }
 0x3ce   : > { %v1165_v44 = vrot.slane %v1163_v42, 1  ;;  %v4780_v42 = vld [vmem:[%s6063_s9 + $0x8] sm:$0xff]  }
 0x3cf   : > { %1722 = vmatpush1.bf16.msra.mxu0 %v4638_v45  ;;  %v1161_v45 = vshrl.u32 %v1048_v39, 16  ;;  %v4779_v39 = vld [vmem:[%s6063_s9] sm:$0xff]  }
 0x3d0   : > { %1723 = vmatprep.subr.bf16.mxu0 %v4643_v46 }
 0x3d1   : > { %v1166_v46 = vor.u32 %v1165_v44, %v1161_v45  ;;  %v4782_v44 = vld [vmem:[%s6063_s9 + $0x18] sm:$0xff]   ;;  %v4783_v45 = vld [vmem:[%s6063_s9 + $0x20] sm:$0xff]  }
 0x3d3   : > { %1724 = vmatpush1.bf16.msra.mxu0 %v4641_v48  ;;  %v4742_v48 = vld [vmem:[%s6061_s7 + $0xb4] ss:$8 sps:$4 sm:$0xff]  }
 0x3d4   : > { %1725 = vmatprep.subr.bf16.mxu0 %v4646_v49  ;;  %v4740_v49 = vld [vmem:[%s6061_s7 + $0xb0] ss:$8 sps:$4 sm:$0xff]   ;;  %2137 = vmatprep.subr.bf16.mxu1 %v4742_v48  ;;  %v4789_v48 = vld [vmem:[#allocation7 + $0x304] ss:$8 sps:$4 sm:$0xff]  }
 0x3d5   : > { %2138 = vmatpush1.bf16.msra.mxu1 %v4740_v49 }
 0x3d7   : > { %1726 = vmatpush1.bf16.msra.mxu0 %v4644_v50  ;;  %v4745_v50 = vld [vmem:[%s6061_s7 + $0xc4] ss:$8 sps:$4 sm:$0xff]  }
 0x3d8   : > { %1727 = vmatprep.subr.bf16.mxu0 %v4649_v53  ;;  %v4743_v53 = vld [vmem:[%s6061_s7 + $0xc0] ss:$8 sps:$4 sm:$0xff]   ;;  %2139 = vmatprep.subr.bf16.mxu1 %v4745_v50 }
 0x3d9   : > { %2140 = vmatpush1.bf16.msra.mxu1 %v4743_v53  ;;  %v3976_v53 = vld [vmem:[%s6062_s8] ss:$0 sm:$0xff] }
 0x3db   : > { %1728 = vmatpush1.bf16.msra.mxu0 %v4647_v54  ;;  %v4748_v54 = vld [vmem:[%s6061_s7 + $0xd4] ss:$8 sps:$4 sm:$0xff]  }
 0x3dc   : > { %1729 = vmatprep.subr.bf16.mxu0 %v4652_v57  ;;  %v4746_v57 = vld [vmem:[%s6061_s7 + $0xd0] ss:$8 sps:$4 sm:$0xff]   ;;  %2141 = vmatprep.subr.bf16.mxu1 %v4748_v54  ;;  %v2330_v54 = vshll.u32 %v5548_v56, 16 }
 0x3dd   : > { %2142 = vmatpush1.bf16.msra.mxu1 %v4746_v57 }
 0x3df   : > { %1730 = vmatpush1.bf16.msra.mxu0 %v4650_v58  ;;  %v4749_v58 = vld [vmem:[%s6061_s7 + $0xe0] ss:$8 sps:$4 sm:$0xff]  }
 0x3e0   : > { %1731 = vmatprep.subr.bf16.mxu0 %v4655_v59  ;;  %v4751_v59 = vld [vmem:[%s6061_s7 + $0xe4] ss:$8 sps:$4 sm:$0xff]  }
 0x3e1   : > { %2143 = vmatprep.subr.bf16.mxu1 %v4751_v59 }
 0x3e2   : > { %2144 = vmatpush1.bf16.msra.mxu1 %v4749_v58 }
 0x3e3   : > { %1732 = vmatpush1.bf16.msra.mxu0 %v4653_v61  ;;  %v4752_v61 = vld [vmem:[%s6061_s7 + $0xf0] ss:$8 sps:$4 sm:$0xff]   ;;  %2145 = vmatprep.subr.bf16.mxu1 %v4754_v60 }
 0x3e4   : > { %1733 = vmatprep.subr.bf16.mxu0 %v4658_v62  ;;  %v4757_v62 = vld [vmem:[%s6061_s7 + $0x104] ss:$8 sps:$4 sm:$0xff]  }
 0x3e6   : > { %2146 = vmatpush1.bf16.msra.mxu1 %v4752_v61  ;;  %v2332_v61 = vrot.slane %v2330_v54, 1  ;;  %v4847_v54 = vld [vmem:[#allocation7 + $0x440] ss:$8 sps:$4 sm:$0xff]  }
 0x3e7   : > { %1734 = vmatpush1.bf16.msra.mxu0 %v4656_v3  ;;  %2156 = vmatprep.subr.bf16.mxu1 %v4757_v62  ;;  %v3927_v3 = vld [vmem:[%s6060_s6] ss:$0 sm:$0xff] }
 0x3e8   : > { %1746 = vmatprep.subr.bf16.mxu0 %v4661_v7 }
 0x3ea   : > { %1736 = vmatmul.mubr.bf16.vlgmr.msra.gmra.mrb[8].mxu0 %v1152_v12 }
 0x3eb   : > { %1747 = vmatpush1.bf16.msra.mxu0 %v4659_v10  ;;  %1778 = vmatprep.mubr.bf16.mxu0 %v1173_v13 }
 0x3ec   : > { %1748 = vmatprep.subr.bf16.mxu0 %v4664_v55 }
 0x3ef   : > { %1749 = vmatpush1.bf16.msra.mxu0 %v4662_v14 }
 0x3f0   : > { %1750 = vmatprep.subr.bf16.mxu0 %v4667_v15 }
 0x3f3   : > { %1751 = vmatpush1.bf16.msra.mxu0 %v4665_v16 }
 0x3f4   : > { %1752 = vmatprep.subr.bf16.mxu0 %v4670_v18 }
 0x3f7   : > { %1753 = vmatpush1.bf16.msra.mxu0 %v4668_v19 }
 0x3f8   : > { %1754 = vmatprep.subr.bf16.mxu0 %v4673_v2 }
 0x3fb   : > { %1755 = vmatpush1.bf16.msra.mxu0 %v4671_v20 }
 0x3fc   : > { %1756 = vmatprep.subr.bf16.mxu0 %v4676_v21 }
 0x3ff   : > { %1757 = vmatpush1.bf16.msra.mxu0 %v4674_v22 }
 0x400   : > { %1758 = vmatprep.subr.bf16.mxu0 %v4679_v23 }
 0x403   : > { %1759 = vmatpush1.bf16.msra.mxu0 %v4677_v1  ;;  %v4755_v1 = vld [vmem:[%s6061_s7 + $0x100] ss:$8 sps:$4 sm:$0xff]  }
 0x404   : > { %1760 = vmatprep.subr.bf16.mxu0 %v4682_v24 }
 0x407   : > { %1761 = vmatpush1.bf16.msra.mxu0 %v4680_v25  ;;  %v4760_v25 = vld [vmem:[%s6061_s7 + $0x114] ss:$8 sps:$4 sm:$0xff]  }
 0x408   : > { %1762 = vmatprep.subr.bf16.mxu0 %v4685_v26  ;;  %v4758_v26 = vld [vmem:[%s6061_s7 + $0x110] ss:$8 sps:$4 sm:$0xff]  }
 0x40b   : > { %1763 = vmatpush1.bf16.msra.mxu0 %v4683_v27  ;;  %v4763_v27 = vld [vmem:[%s6061_s7 + $0x124] ss:$8 sps:$4 sm:$0xff]  }
 0x40c   : > { %1764 = vmatprep.subr.bf16.mxu0 %v4688_v28  ;;  %v4761_v28 = vld [vmem:[%s6061_s7 + $0x120] ss:$8 sps:$4 sm:$0xff]  }
 0x40f   : > { %1765 = vmatpush1.bf16.msra.mxu0 %v4686_v29  ;;  %v4766_v29 = vld [vmem:[%s6061_s7 + $0x134] ss:$8 sps:$4 sm:$0xff]  }
 0x410   : > { %1766 = vmatprep.subr.bf16.mxu0 %v4691_v30  ;;  %v4764_v30 = vld [vmem:[%s6061_s7 + $0x130] ss:$8 sps:$4 sm:$0xff]  }
 0x413   : > { %1767 = vmatpush1.bf16.msra.mxu0 %v4689_v31  ;;  %v4769_v31 = vld [vmem:[%s6061_s7 + $0x144] ss:$8 sps:$4 sm:$0xff]  }
 0x414   : > { %1768 = vmatprep.subr.bf16.mxu0 %v4694_v32  ;;  %v4767_v32 = vld [vmem:[%s6061_s7 + $0x140] ss:$8 sps:$4 sm:$0xff]  }
 0x417   : > { %1769 = vmatpush1.bf16.msra.mxu0 %v4692_v33  ;;  %v4772_v33 = vld [vmem:[%s6061_s7 + $0x154] ss:$8 sps:$4 sm:$0xff]  }
 0x418   : > { %1770 = vmatprep.subr.bf16.mxu0 %v4697_v34  ;;  %v4770_v34 = vld [vmem:[%s6061_s7 + $0x150] ss:$8 sps:$4 sm:$0xff]  }
 0x41b   : > { %1771 = vmatpush1.bf16.msra.mxu0 %v4695_v35  ;;  %v4775_v35 = vld [vmem:[%s6061_s7 + $0x164] ss:$8 sps:$4 sm:$0xff]  }
 0x41c   : > { %1772 = vmatprep.subr.bf16.mxu0 %v4700_v36  ;;  %v4773_v36 = vld [vmem:[%s6061_s7 + $0x160] ss:$8 sps:$4 sm:$0xff]  }
 0x41f   : > { %1773 = vmatpush1.bf16.msra.mxu0 %v4698_v37  ;;  %v4778_v37 = vld [vmem:[%s6061_s7 + $0x174] ss:$8 sps:$4 sm:$0xff]  }
 0x420   : > { %1774 = vmatprep.subr.bf16.mxu0 %v4703_v38  ;;  %v4776_v38 = vld [vmem:[%s6061_s7 + $0x170] ss:$8 sps:$4 sm:$0xff]  }
 0x423   : > { %1775 = vmatpush1.bf16.msra.mxu0 %v4701_v40 }
 0x424   : > { %1776 = vmatprep.subr.bf16.mxu0 %v4706_v41  ;;  %v5229_v41 = vmov 0.0  }
 0x427   : > { %1777 = vmatpush1.bf16.msra.mxu0 %v4704_v43  ;;  %v4781_v43 = vld [vmem:[%s6063_s9 + $0x10] sm:$0xff]  }
 0x42a   : > { %1779 = vmatmul.mubr.bf16.vlgmr.msra.gmra.mrb[8].mxu0 %v1166_v46  ;;  %v4784_v46 = vld [vmem:[%s6063_s9 + $0x28] sm:$0xff]  }
 0x4fd   : > { %v1780_v63 = vpop.f32.mrb[8].mxu0 }
 0x4fe   : > { %v1782_v0 = vpop.f32.mrb[9].mxu0 }
 0x4ff   : > { %v1789_v4 = vmax.f32 %v1780_v63, %v1782_v0  ;;  %v1784_v7 = vpop.f32.mrb[10].mxu0  ;;  %v4787_v63 = vld [vmem:[#allocation7 + $0x300] ss:$8 sps:$4 sm:$0xff]   ;;  %v2328_v0 = vshrl.u32 %v5548_v56, 16 }
 0x500   : > { %v1786_v8 = vpop.f32.mrb[11].mxu0 }
 0x501   : > { %v1798_v9 = vadd.f32 %v3927_v3, %v1789_v4  ;;  %v1790_v10 = vmax.f32 %v1784_v7, %v1786_v8  ;;  %v4792_v4 = vld [vmem:[#allocation7 + $0x314] ss:$8 sps:$4 sm:$0xff]   ;;  %v5753_v7 = vor.u32 %v2332_v61, %v2328_v0  ;;  %v4790_v8 = vld [vmem:[#allocation7 + $0x310] ss:$8 sps:$4 sm:$0xff]  }
 0x502   : > { %v4858_v61 = vld [vmem:[#allocation7 + $0x474] ss:$8 sps:$4 sm:$0xff]  }
 0x503   : > { %v1800_v11 = vmax.f32 %v1798_v9, 0.0  ;;  %v1799_v12 = vadd.f32 %v3927_v3, %v1790_v10  ;;  %v4795_v9 = vld [vmem:[#allocation7 + $0x324] ss:$8 sps:$4 sm:$0xff]   ;;  %v4793_v10 = vld [vmem:[#allocation7 + $0x320] ss:$8 sps:$4 sm:$0xff]  }
 0x504   : > { %v4936_v0 = vld [vmem:[%s6061_s7 + $0x194] ss:$8 sps:$4 sm:$0xff]  }
 0x505   : > { %v1801_v55 = vmax.f32 %v1799_v12, 0.0  ;;  %v1805_v13 = vrot.slane %v1800_v11, 6  ;;  %v4798_v11 = vld [vmem:[#allocation7 + $0x334] ss:$8 sps:$4 sm:$0xff]   ;;  %v4796_v12 = vld [vmem:[#allocation7 + $0x330] ss:$8 sps:$4 sm:$0xff]  }
 0x507   : > { %v1806_v14 = vrot.slane %v1801_v55, 6  ;;  %v1810_v16 = vsel %vm697_vm2, %v1805_v13, 0.0  ;;  %v4801_v55 = vld [vmem:[#allocation7 + $0x344] ss:$8 sps:$4 sm:$0xff]  }
 0x509   : > { %v1807_v15 = vsel %vm1804_vm6, %v1805_v13, %v1806_v14  ;;  %v4799_v13 = vld [vmem:[#allocation7 + $0x340] ss:$8 sps:$4 sm:$0xff]   ;;  %v4804_v14 = vld [vmem:[#allocation7 + $0x354] ss:$8 sps:$4 sm:$0xff]  }
 0x50a   : > { %v1811_v18 = vsel %vm700_vm1, %v1807_v15, 0.0  ;;  %v4802_v15 = vld [vmem:[#allocation7 + $0x350] ss:$8 sps:$4 sm:$0xff]  }
 0x50b   : > { %v1812_v19 = vpack.c.bf16 %v1811_v18, %v1810_v16  ;;  %v4807_v16 = vld [vmem:[#allocation7 + $0x364] ss:$8 sps:$4 sm:$0xff]   ;;  %v4805_v18 = vld [vmem:[#allocation7 + $0x360] ss:$8 sps:$4 sm:$0xff]  }
 0x50d   : > { %v1816_v2 = vshll.u32 %v1812_v19, 16  ;;  %v1814_v20 = vshrl.u32 %v1812_v19, 16  ;;  %v1821_v24 = vrot.slane %v1812_v19, 1  ;;  %v4810_v19 = vld [vmem:[#allocation7 + $0x374] ss:$8 sps:$4 sm:$0xff]  }
 0x50f   : > { %v1818_v21 = vrot.slane %v1816_v2, 1  ;;  %v1871_v40 = vrot.slane %v1821_v24, 1  ;;  %v4808_v2 = vld [vmem:[#allocation7 + $0x370] ss:$8 sps:$4 sm:$0xff]  }
 0x511   : > { %v1819_v22 = vor.u32 %v1818_v21, %v1814_v20  ;;  %v4813_v20 = vld [vmem:[#allocation7 + $0x384] ss:$8 sps:$4 sm:$0xff]   ;;  %v4811_v21 = vld [vmem:[#allocation7 + $0x380] ss:$8 sps:$4 sm:$0xff]  }
 0x513   : > { %v1870_v23 = vrot.slane %v1819_v22, 1  ;;  %v4816_v22 = vld [vmem:[#allocation7 + $0x394] ss:$8 sps:$4 sm:$0xff]  }
 0x515   : > { %2147 = vmatprep.mubr.bf16.mxu1 %v1870_v23  ;;  %v4814_v23 = vld [vmem:[#allocation7 + $0x390] ss:$8 sps:$4 sm:$0xff]  }
 0x516   : > { %2148 = vmatmul.mubr.bf16.vlgmr.msra.gmra.mrb[8].mxu1 %v1821_v24  ;;  %v4817_v24 = vld [vmem:[#allocation7 + $0x3a0] ss:$8 sps:$4 sm:$0xff]  }
 0x517   : > { %2157 = vmatpush1.bf16.msra.mxu1 %v4755_v1  ;;  %2188 = vmatprep.mubr.bf16.mxu1 %v5226_v17  ;;  %v4819_v1 = vld [vmem:[#allocation7 + $0x3a4] ss:$8 sps:$4 sm:$0xff]  }
 0x518   : > { %2158 = vmatprep.subr.bf16.mxu1 %v4760_v25  ;;  %v4822_v25 = vld [vmem:[#allocation7 + $0x3b4] ss:$8 sps:$4 sm:$0xff]  }
 0x51b   : > { %2159 = vmatpush1.bf16.msra.mxu1 %v4758_v26  ;;  %v4820_v26 = vld [vmem:[#allocation7 + $0x3b0] ss:$8 sps:$4 sm:$0xff]  }
 0x51c   : > { %2160 = vmatprep.subr.bf16.mxu1 %v4763_v27  ;;  %v4825_v27 = vld [vmem:[#allocation7 + $0x3c4] ss:$8 sps:$4 sm:$0xff]  }
 0x51f   : > { %2161 = vmatpush1.bf16.msra.mxu1 %v4761_v28  ;;  %v4823_v28 = vld [vmem:[#allocation7 + $0x3c0] ss:$8 sps:$4 sm:$0xff]  }
 0x520   : > { %2162 = vmatprep.subr.bf16.mxu1 %v4766_v29  ;;  %v4828_v29 = vld [vmem:[#allocation7 + $0x3d4] ss:$8 sps:$4 sm:$0xff]  }
 0x523   : > { %2163 = vmatpush1.bf16.msra.mxu1 %v4764_v30  ;;  %v4826_v30 = vld [vmem:[#allocation7 + $0x3d0] ss:$8 sps:$4 sm:$0xff]  }
 0x524   : > { %2164 = vmatprep.subr.bf16.mxu1 %v4769_v31  ;;  %v4831_v31 = vld [vmem:[#allocation7 + $0x3e4] ss:$8 sps:$4 sm:$0xff]  }
 0x527   : > { %2165 = vmatpush1.bf16.msra.mxu1 %v4767_v32  ;;  %v4829_v32 = vld [vmem:[#allocation7 + $0x3e0] ss:$8 sps:$4 sm:$0xff]  }
 0x528   : > { %2166 = vmatprep.subr.bf16.mxu1 %v4772_v33  ;;  %v4834_v33 = vld [vmem:[#allocation7 + $0x3f4] ss:$8 sps:$4 sm:$0xff]  }
 0x52b   : > { %2167 = vmatpush1.bf16.msra.mxu1 %v4770_v34  ;;  %v2323_v34 = vshll.u32 %v5540_v52, 16 }
 0x52c   : > { %2168 = vmatprep.subr.bf16.mxu1 %v4775_v35  ;;  %v2445_v35 = vshll.u32 %v5753_v7, 16 }
 0x52f   : > { %2169 = vmatpush1.bf16.msra.mxu1 %v4773_v36  ;;  %v4832_v36 = vld [vmem:[#allocation7 + $0x3f0] ss:$8 sps:$4 sm:$0xff]  }
 0x530   : > { %2170 = vmatprep.subr.bf16.mxu1 %v4778_v37  ;;  %v2325_v37 = vrot.slane %v2323_v34, 1  ;;  %v4882_v34 = vld [vmem:[#allocation7 + $0x4f4] ss:$8 sps:$4 sm:$0xff]  }
 0x533   : > { %2171 = vmatpush1.bf16.msra.mxu1 %v4776_v38  ;;  %v4837_v38 = vld [vmem:[#allocation7 + $0x404] ss:$8 sps:$4 sm:$0xff]  }
 0x534   : > { %4315 = vmatprep.subr.bf16.mxu1 %v5229_v41 }
 0x536   : > { %2189 = vmatmul.mubr.bf16.vlgmr.msra.gmra.mrb[8].mxu1 %v1871_v40  ;;  %v2321_v40 = vshrl.u32 %v5540_v52, 16 }
 0x537   : > { %4316 = vmatpush3.bf16.msra.mxu1 %v4779_v39  ;;  %4331 = vmatprep.mubr.msk.bf16.mxu1 %vm5230_vm7, %v5229_v41  ;;  %v2447_v39 = vrot.slane %v2445_v35, 1 }
 0x538   : > { %4317 = vmatprep.subr.bf16.mxu1 %v5229_v41 }
 0x53b   : > { %4318 = vmatpush3.bf16.msra.mxu1 %v4780_v42  ;;  %v4835_v42 = vld [vmem:[#allocation7 + $0x400] ss:$8 sps:$4 sm:$0xff]  }
 0x53c   : > { %4319 = vmatprep.subr.bf16.mxu1 %v5229_v41 }
 0x53f   : > { %4320 = vmatpush3.bf16.msra.mxu1 %v4781_v43  ;;  %v2443_v43 = vshrl.u32 %v5753_v7, 16 }
 0x540   : > { %4321 = vmatprep.subr.bf16.mxu1 %v5229_v41 }
 0x543   : > { %4322 = vmatpush3.bf16.msra.mxu1 %v4782_v44  ;;  %v5760_v44 = vor.u32 %v2325_v37, %v2321_v40  ;;  %v4885_v40 = vld [vmem:[#allocation7 + $0x504] ss:$8 sps:$4 sm:$0xff]  }
 0x544   : > { %4323 = vmatprep.subr.bf16.mxu1 %v5229_v41 }
 0x545   : > { %v2438_v35 = vshll.u32 %v5760_v44, 16 }
 0x547   : > { %4324 = vmatpush3.bf16.msra.mxu1 %v4783_v45  ;;  %v4840_v45 = vld [vmem:[#allocation7 + $0x414] ss:$8 sps:$4 sm:$0xff]  }
 0x548   : > { %4325 = vmatprep.subr.bf16.mxu1 %v5229_v41 }
 0x54b   : > { %4326 = vmatpush3.bf16.msra.mxu1 %v4784_v46  ;;  %v2448_v46 = vor.u32 %v2447_v39, %v2443_v43  ;;  %v2440_v39 = vrot.slane %v2438_v35, 1  ;;  %v2436_v43 = vshrl.u32 %v5760_v44, 16  ;;  %v4972_v35 = vld [vmem:[%s6061_s7 + $0x254] ss:$8 sps:$4 sm:$0xff]  }
 0x54c   : > { %4327 = vmatprep.subr.bf16.mxu1 %v5229_v41 }
 0x54f   : > { %4328 = vmatpush3.bf16.msra.mxu1 %v4785_v47  ;;  %v4838_v47 = vld [vmem:[#allocation7 + $0x410] ss:$8 sps:$4 sm:$0xff]  }
 0x550   : > { %4329 = vmatprep.subr.bf16.mxu1 %v5229_v41 }
 0x553   : > { %4330 = vmatpush3.bf16.msra.mxu1 %v4786_v51  ;;  %v4843_v51 = vld [vmem:[#allocation7 + $0x424] ss:$8 sps:$4 sm:$0xff]  }
 0x554   : > { %2949 = vmatprep.subr.bf16.mxu1 %v4789_v48  ;;  %v4841_v48 = vld [vmem:[#allocation7 + $0x420] ss:$8 sps:$4 sm:$0xff]  }
 0x609   : > { %v2190_v49 = vpop.f32.mrb[8].mxu1 }
 0x60a   : > { %v2192_v50 = vpop.f32.mrb[9].mxu1 }
 0x60b   : > { %v2197_v57 = vmax.f32 %v2190_v49, %v2192_v50  ;;  %v2194_v58 = vpop.f32.mrb[10].mxu1  ;;  %v4846_v49 = vld [vmem:[#allocation7 + $0x434] ss:$8 sps:$4 sm:$0xff]   ;;  %v4844_v50 = vld [vmem:[#allocation7 + $0x430] ss:$8 sps:$4 sm:$0xff]  }
 0x60c   : > { %v2195_v59 = vpop.f32.mrb[11].mxu1  ;;  %v4850_v58 = vld [vmem:[#allocation7 + $0x450] ss:$8 sps:$4 sm:$0xff]  }
 0x60d   : > { %v2205_v60 = vadd.f32 %v3976_v53, %v2197_v57  ;;  %v4849_v53 = vld [vmem:[#allocation7 + $0x444] ss:$8 sps:$4 sm:$0xff]   ;;  %v4852_v57 = vld [vmem:[#allocation7 + $0x454] ss:$8 sps:$4 sm:$0xff]  }
 0x60e   : > { %v4855_v59 = vld [vmem:[#allocation7 + $0x464] ss:$8 sps:$4 sm:$0xff]  }
 0x60f   : > { %v2206_v62 = vmax.f32 %v2205_v60, 0.0  ;;  %v4853_v60 = vld [vmem:[#allocation7 + $0x460] ss:$8 sps:$4 sm:$0xff]  }
 0x611   : > { %v2207_v3 = vpack.c.bf16 %v2206_v62, %v2206_v62  ;;  %v4931_v62 = vld [vmem:[%s6061_s7 + $0x180] ss:$8 sps:$4 sm:$0xff]  }
 0x613   : > { %4332 = vmatmul.mubr.bf16.vlgmr.msra.gmra.mrb[12].mxu1 %v2207_v3  ;;  %v4856_v3 = vld [vmem:[#allocation7 + $0x470] ss:$8 sps:$4 sm:$0xff]  }
 0x614   : > { %2950 = vmatpush1.bf16.msra.mxu1 %v4787_v63  ;;  %2981 = vmatprep.mubr.bf16.mxu1 %v5753_v7  ;;  %v4933_v63 = vld [vmem:[%s6061_s7 + $0x184] ss:$8 sps:$4 sm:$0xff]  }
 0x615   : > { %2951 = vmatprep.subr.bf16.mxu1 %v4792_v4  ;;  %3405 = vmatprep.subr.bf16.mxu0 %v4933_v63  ;;  %v4934_v4 = vld [vmem:[%s6061_s7 + $0x190] ss:$8 sps:$4 sm:$0xff]   ;;  %v4861_v7 = vld [vmem:[#allocation7 + $0x484] ss:$8 sps:$4 sm:$0xff]   ;;  %v4906_v63 = vld [vmem:[#allocation7 + $0x574] ss:$8 sps:$4 sm:$0xff]  }
 0x616   : > { %3406 = vmatpush1.bf16.msra.mxu0 %v4931_v62  ;;  %v4901_v62 = vld [vmem:[#allocation7 + $0x560] ss:$8 sps:$4 sm:$0xff]  }
 0x617   : > { %3407 = vmatprep.subr.bf16.mxu0 %v4936_v0  ;;  %v4904_v0 = vld [vmem:[#allocation7 + $0x570] ss:$8 sps:$4 sm:$0xff]  }
 0x618   : > { %2952 = vmatpush1.bf16.msra.mxu1 %v4790_v8  ;;  %v4939_v8 = vld [vmem:[%s6061_s7 + $0x1a4] ss:$8 sps:$4 sm:$0xff]  }
 0x619   : > { %2953 = vmatprep.subr.bf16.mxu1 %v4795_v9  ;;  %v4859_v9 = vld [vmem:[#allocation7 + $0x480] ss:$8 sps:$4 sm:$0xff]  }
 0x61a   : > { %3408 = vmatpush1.bf16.msra.mxu0 %v4934_v4  ;;  %v4907_v4 = vld [vmem:[#allocation7 + $0x580] ss:$8 sps:$4 sm:$0xff]  }
 0x61b   : > { %3409 = vmatprep.subr.bf16.mxu0 %v4939_v8  ;;  %v4910_v8 = vld [vmem:[#allocation7 + $0x590] ss:$8 sps:$4 sm:$0xff]  }
 0x61c   : > { %2954 = vmatpush1.bf16.msra.mxu1 %v4793_v10  ;;  %v4937_v10 = vld [vmem:[%s6061_s7 + $0x1a0] ss:$8 sps:$4 sm:$0xff]  }
 0x61d   : > { %2955 = vmatprep.subr.bf16.mxu1 %v4798_v11  ;;  %v4864_v11 = vld [vmem:[#allocation7 + $0x494] ss:$8 sps:$4 sm:$0xff]  }
 0x61e   : > { %3410 = vmatpush1.bf16.msra.mxu0 %v4937_v10  ;;  %v4913_v10 = vld [vmem:[#allocation7 + $0x5a0] ss:$8 sps:$4 sm:$0xff]  }
 0x620   : > { %2956 = vmatpush1.bf16.msra.mxu1 %v4796_v12  ;;  %v4942_v12 = vld [vmem:[%s6061_s7 + $0x1b4] ss:$8 sps:$4 sm:$0xff]  }
 0x621   : > { %2957 = vmatprep.subr.bf16.mxu1 %v4801_v55  ;;  %v4862_v55 = vld [vmem:[#allocation7 + $0x490] ss:$8 sps:$4 sm:$0xff]   ;;  %3411 = vmatprep.subr.bf16.mxu0 %v4942_v12 }
 0x622   : > { %v4916_v12 = vld [vmem:[#allocation7 + $0x5b0] ss:$8 sps:$4 sm:$0xff]  }
 0x624   : > { %2958 = vmatpush1.bf16.msra.mxu1 %v4799_v13  ;;  %v4940_v13 = vld [vmem:[%s6061_s7 + $0x1b0] ss:$8 sps:$4 sm:$0xff]  }
 0x625   : > { %2959 = vmatprep.subr.bf16.mxu1 %v4804_v14  ;;  %v4867_v14 = vld [vmem:[#allocation7 + $0x4a4] ss:$8 sps:$4 sm:$0xff]   ;;  %3412 = vmatpush1.bf16.msra.mxu0 %v4940_v13  ;;  %v4919_v13 = vld [vmem:[#allocation7 + $0x5c0] ss:$8 sps:$4 sm:$0xff]  }
 0x628   : > { %2960 = vmatpush1.bf16.msra.mxu1 %v4802_v15  ;;  %v4945_v15 = vld [vmem:[%s6061_s7 + $0x1c4] ss:$8 sps:$4 sm:$0xff]  }
 0x629   : > { %2961 = vmatprep.subr.bf16.mxu1 %v4807_v16  ;;  %v4865_v16 = vld [vmem:[#allocation7 + $0x4a0] ss:$8 sps:$4 sm:$0xff]   ;;  %3413 = vmatprep.subr.bf16.mxu0 %v4945_v15  ;;  %v4922_v15 = vld [vmem:[#allocation7 + $0x5d0] ss:$8 sps:$4 sm:$0xff]  }
 0x62c   : > { %2962 = vmatpush1.bf16.msra.mxu1 %v4805_v18  ;;  %v4943_v18 = vld [vmem:[%s6061_s7 + $0x1c0] ss:$8 sps:$4 sm:$0xff]  }
 0x62d   : > { %2963 = vmatprep.subr.bf16.mxu1 %v4810_v19  ;;  %v4870_v19 = vld [vmem:[#allocation7 + $0x4b4] ss:$8 sps:$4 sm:$0xff]   ;;  %3414 = vmatpush1.bf16.msra.mxu0 %v4943_v18  ;;  %v2336_v18 = vrot.slane %v5540_v52, 1  ;;  %v3977_v52 = vld [vmem:[%s6064_s10] ss:$0 sm:$0xff] }
 0x630   : > { %2964 = vmatpush1.bf16.msra.mxu1 %v4808_v2  ;;  %v4948_v2 = vld [vmem:[%s6061_s7 + $0x1d4] ss:$8 sps:$4 sm:$0xff]  }
 0x631   : > { %2965 = vmatprep.subr.bf16.mxu1 %v4813_v20  ;;  %v4868_v20 = vld [vmem:[#allocation7 + $0x4b0] ss:$8 sps:$4 sm:$0xff]   ;;  %3415 = vmatprep.subr.bf16.mxu0 %v4948_v2  ;;  %v4930_v2 = vld [vmem:[#allocation7 + $0x5f4] ss:$8 sps:$4 sm:$0xff]  }
 0x634   : > { %2966 = vmatpush1.bf16.msra.mxu1 %v4811_v21  ;;  %v4946_v21 = vld [vmem:[%s6061_s7 + $0x1d0] ss:$8 sps:$4 sm:$0xff]  }
 0x635   : > { %2967 = vmatprep.subr.bf16.mxu1 %v4816_v22  ;;  %v4873_v22 = vld [vmem:[#allocation7 + $0x4c4] ss:$8 sps:$4 sm:$0xff]   ;;  %3416 = vmatpush1.bf16.msra.mxu0 %v4946_v21  ;;  %v4928_v21 = vld [vmem:[#allocation7 + $0x5f0] ss:$8 sps:$4 sm:$0xff]  }
 0x638   : > { %2968 = vmatpush1.bf16.msra.mxu1 %v4814_v23  ;;  %v4951_v23 = vld [vmem:[%s6061_s7 + $0x1e4] ss:$8 sps:$4 sm:$0xff]  }
 0x639   : > { %2969 = vmatprep.subr.bf16.mxu1 %v4819_v1  ;;  %v4871_v1 = vld [vmem:[#allocation7 + $0x4c0] ss:$8 sps:$4 sm:$0xff]   ;;  %3417 = vmatprep.subr.bf16.mxu0 %v4951_v23  ;;  %v2450_v23 = vshrl.u32 %v2336_v18, 16 }
 0x63c   : > { %2970 = vmatpush1.bf16.msra.mxu1 %v4817_v24  ;;  %v4949_v24 = vld [vmem:[%s6061_s7 + $0x1e0] ss:$8 sps:$4 sm:$0xff]  }
 0x63d   : > { %2971 = vmatprep.subr.bf16.mxu1 %v4822_v25  ;;  %v4876_v25 = vld [vmem:[#allocation7 + $0x4d4] ss:$8 sps:$4 sm:$0xff]   ;;  %3418 = vmatpush1.bf16.msra.mxu0 %v4949_v24 }
 0x640   : > { %2972 = vmatpush1.bf16.msra.mxu1 %v4820_v26  ;;  %v4954_v26 = vld [vmem:[%s6061_s7 + $0x1f4] ss:$8 sps:$4 sm:$0xff]  }
 0x641   : > { %2973 = vmatprep.subr.bf16.mxu1 %v4825_v27  ;;  %v4874_v27 = vld [vmem:[#allocation7 + $0x4d0] ss:$8 sps:$4 sm:$0xff]   ;;  %3419 = vmatprep.subr.bf16.mxu0 %v4954_v26 }
 0x644   : > { %2974 = vmatpush1.bf16.msra.mxu1 %v4823_v28  ;;  %v4952_v28 = vld [vmem:[%s6061_s7 + $0x1f0] ss:$8 sps:$4 sm:$0xff]  }
 0x645   : > { %2975 = vmatprep.subr.bf16.mxu1 %v4828_v29  ;;  %v4879_v29 = vld [vmem:[#allocation7 + $0x4e4] ss:$8 sps:$4 sm:$0xff]   ;;  %3420 = vmatpush1.bf16.msra.mxu0 %v4952_v28 }
 0x648   : > { %2976 = vmatpush1.bf16.msra.mxu1 %v4826_v30  ;;  %v4957_v30 = vld [vmem:[%s6061_s7 + $0x204] ss:$8 sps:$4 sm:$0xff]  }
 0x649   : > { %2977 = vmatprep.subr.bf16.mxu1 %v4831_v31  ;;  %v2337_v31 = vrot.slane %v5548_v56, 1  ;;  %3421 = vmatprep.subr.bf16.mxu0 %v4957_v30  ;;  %v4958_v56 = vld [vmem:[%s6061_s7 + $0x210] ss:$8 sps:$4 sm:$0xff]   ;;  %v4963_v30 = vld [vmem:[%s6061_s7 + $0x224] ss:$8 sps:$4 sm:$0xff]  }
 0x64b   : > { %v2459_v37 = vshll.u32 %v2337_v31, 16 }
 0x64c   : > { %2978 = vmatpush1.bf16.msra.mxu1 %v4829_v32  ;;  %v4877_v32 = vld [vmem:[#allocation7 + $0x4e0] ss:$8 sps:$4 sm:$0xff]  }
 0x64d   : > { %2979 = vmatprep.subr.bf16.mxu1 %v4834_v33  ;;  %v4955_v33 = vld [vmem:[%s6061_s7 + $0x200] ss:$8 sps:$4 sm:$0xff]  }
 0x64e   : > { %3422 = vmatpush1.bf16.msra.mxu0 %v4955_v33  ;;  %v4969_v33 = vld [vmem:[%s6061_s7 + $0x244] ss:$8 sps:$4 sm:$0xff]  }
 0x650   : > { %2980 = vmatpush1.bf16.msra.mxu1 %v4832_v36  ;;  %v4960_v36 = vld [vmem:[%s6061_s7 + $0x214] ss:$8 sps:$4 sm:$0xff]  }
 0x651   : > { %2992 = vmatprep.subr.bf16.mxu1 %v4837_v38  ;;  %v4880_v38 = vld [vmem:[#allocation7 + $0x4f0] ss:$8 sps:$4 sm:$0xff]   ;;  %3423 = vmatprep.subr.bf16.mxu0 %v4960_v36 }
 0x652   : > { %3424 = vmatpush1.bf16.msra.mxu0 %v4958_v56  ;;  %v4970_v36 = vld [vmem:[%s6061_s7 + $0x250] ss:$8 sps:$4 sm:$0xff]   ;;  %v4978_v56 = vld [vmem:[%s6061_s7 + $0x274] ss:$8 sps:$4 sm:$0xff]  }
 0x653   : > { %2982 = vmatmul.mubr.bf16.vlgmr.msra.gmra.mrb[16].mxu1 %v5760_v44  ;;  %v4892_v44 = vld [vmem:[#allocation7 + $0x530] ss:$8 sps:$4 sm:$0xff]   ;;  %3425 = vmatprep.subr.bf16.mxu0 %v4963_v30 }
 0x654   : > { %2993 = vmatpush1.bf16.msra.mxu1 %v4835_v42  ;;  %3024 = vmatprep.mubr.bf16.mxu1 %v2448_v46  ;;  %v2461_v42 = vrot.slane %v2459_v37, 1  ;;  %v2457_v46 = vshrl.u32 %v2337_v31, 16  ;;  %v4966_v31 = vld [vmem:[%s6061_s7 + $0x234] ss:$8 sps:$4 sm:$0xff]   ;;  %v4975_v37 = vld [vmem:[%s6061_s7 + $0x264] ss:$8 sps:$4 sm:$0xff]  }
 0x655   : > { %2994 = vmatprep.subr.bf16.mxu1 %v4840_v45  ;;  %v4883_v45 = vld [vmem:[#allocation7 + $0x500] ss:$8 sps:$4 sm:$0xff]  }
 0x658   : > { %2995 = vmatpush1.bf16.msra.mxu1 %v4838_v47  ;;  %v2441_v47 = vor.u32 %v2440_v39, %v2436_v43  ;;  %v4976_v39 = vld [vmem:[%s6061_s7 + $0x270] ss:$8 sps:$4 sm:$0xff]  }
 0x659   : > { %2996 = vmatprep.subr.bf16.mxu1 %v4843_v51  ;;  %v4888_v51 = vld [vmem:[#allocation7 + $0x514] ss:$8 sps:$4 sm:$0xff]  }
 0x65c   : > { %2997 = vmatpush1.bf16.msra.mxu1 %v4841_v48  ;;  %v2462_v48 = vor.u32 %v2461_v42, %v2457_v46 }
 0x65d   : > { %2998 = vmatprep.subr.bf16.mxu1 %v4846_v49  ;;  %v4886_v49 = vld [vmem:[#allocation7 + $0x510] ss:$8 sps:$4 sm:$0xff]  }
 0x660   : > { %2999 = vmatpush1.bf16.msra.mxu1 %v4844_v50  ;;  %v4891_v50 = vld [vmem:[#allocation7 + $0x524] ss:$8 sps:$4 sm:$0xff]  }
 0x661   : > { %3000 = vmatprep.subr.bf16.mxu1 %v4849_v53  ;;  %v4889_v53 = vld [vmem:[#allocation7 + $0x520] ss:$8 sps:$4 sm:$0xff]  }
 0x664   : > { %3001 = vmatpush1.bf16.msra.mxu1 %v4847_v54  ;;  %v4894_v54 = vld [vmem:[#allocation7 + $0x534] ss:$8 sps:$4 sm:$0xff]  }
 0x665   : > { %3002 = vmatprep.subr.bf16.mxu1 %v4852_v57  ;;  %v4897_v57 = vld [vmem:[#allocation7 + $0x544] ss:$8 sps:$4 sm:$0xff]  }
 0x668   : > { %3003 = vmatpush1.bf16.msra.mxu1 %v4850_v58  ;;  %v4895_v58 = vld [vmem:[#allocation7 + $0x540] ss:$8 sps:$4 sm:$0xff]  }
 0x669   : > { %3004 = vmatprep.subr.bf16.mxu1 %v4855_v59  ;;  %v4900_v59 = vld [vmem:[#allocation7 + $0x554] ss:$8 sps:$4 sm:$0xff]  }
 0x66c   : > { %3005 = vmatpush1.bf16.msra.mxu1 %v4853_v60  ;;  %v4898_v60 = vld [vmem:[#allocation7 + $0x550] ss:$8 sps:$4 sm:$0xff]  }
 0x66d   : > { %3006 = vmatprep.subr.bf16.mxu1 %v4858_v61  ;;  %v4903_v61 = vld [vmem:[#allocation7 + $0x564] ss:$8 sps:$4 sm:$0xff]  }
 0x670   : > { %3007 = vmatpush1.bf16.msra.mxu1 %v4856_v3  ;;  %v4909_v3 = vld [vmem:[#allocation7 + $0x584] ss:$8 sps:$4 sm:$0xff]  }
 0x671   : > { %3008 = vmatprep.subr.bf16.mxu1 %v4861_v7  ;;  %v4912_v7 = vld [vmem:[#allocation7 + $0x594] ss:$8 sps:$4 sm:$0xff]  }
 0x674   : > { %3009 = vmatpush1.bf16.msra.mxu1 %v4859_v9  ;;  %v4915_v9 = vld [vmem:[#allocation7 + $0x5a4] ss:$8 sps:$4 sm:$0xff]  }
 0x675   : > { %3010 = vmatprep.subr.bf16.mxu1 %v4864_v11  ;;  %v4918_v11 = vld [vmem:[#allocation7 + $0x5b4] ss:$8 sps:$4 sm:$0xff]  }
 0x678   : > { %3011 = vmatpush1.bf16.msra.mxu1 %v4862_v55  ;;  %v4921_v55 = vld [vmem:[#allocation7 + $0x5c4] ss:$8 sps:$4 sm:$0xff]  }
 0x679   : > { %3012 = vmatprep.subr.bf16.mxu1 %v4867_v14  ;;  %v4924_v14 = vld [vmem:[#allocation7 + $0x5d4] ss:$8 sps:$4 sm:$0xff]  }
 0x67c   : > { %3013 = vmatpush1.bf16.msra.mxu1 %v4865_v16  ;;  %v4927_v16 = vld [vmem:[#allocation7 + $0x5e4] ss:$8 sps:$4 sm:$0xff]  }
 0x67d   : > { %3014 = vmatprep.subr.bf16.mxu1 %v4870_v19  ;;  %v4925_v19 = vld [vmem:[#allocation7 + $0x5e0] ss:$8 sps:$4 sm:$0xff]  }
 0x680   : > { %3015 = vmatpush1.bf16.msra.mxu1 %v4868_v20  ;;  %v2452_v20 = vshll.u32 %v2336_v18, 16  ;;  %v5002_v18 = vld [vmem:[%s6061_s7 + $0x2f4] ss:$8 sps:$4 sm:$0xff]  }
 0x681   : > { %3016 = vmatprep.subr.bf16.mxu1 %v4873_v22 }
 0x682   : > { %v2454_v22 = vrot.slane %v2452_v20, 1 }
 0x684   : > { %3017 = vmatpush1.bf16.msra.mxu1 %v4871_v1  ;;  %v2455_v1 = vor.u32 %v2454_v22, %v2450_v23  ;;  %v5005_v22 = vld [vmem:[%s6063_s9 + $0x50] sm:$0xff]   ;;  %v5006_v23 = vld [vmem:[%s6063_s9 + $0x58] sm:$0xff]  }
 0x685   : > { %3018 = vmatprep.subr.bf16.mxu1 %v4876_v25 }
 0x688   : > { %3019 = vmatpush1.bf16.msra.mxu1 %v4874_v27 }
 0x689   : > { %3020 = vmatprep.subr.bf16.mxu1 %v4879_v29  ;;  %v4961_v29 = vld [vmem:[%s6061_s7 + $0x220] ss:$8 sps:$4 sm:$0xff]  }
 0x68a   : > { %3426 = vmatpush1.bf16.msra.mxu0 %v4961_v29 }
 0x68b   : > { %3427 = vmatprep.subr.bf16.mxu0 %v4966_v31 }
 0x68c   : > { %3021 = vmatpush1.bf16.msra.mxu1 %v4877_v32  ;;  %v4964_v32 = vld [vmem:[%s6061_s7 + $0x230] ss:$8 sps:$4 sm:$0xff]  }
 0x68d   : > { %3022 = vmatprep.subr.bf16.mxu1 %v4882_v34  ;;  %v4967_v34 = vld [vmem:[%s6061_s7 + $0x240] ss:$8 sps:$4 sm:$0xff]  }
 0x68e   : > { %3428 = vmatpush1.bf16.msra.mxu0 %v4964_v32 }
 0x68f   : > { %3429 = vmatprep.subr.bf16.mxu0 %v4969_v33 }
 0x690   : > { %3023 = vmatpush1.bf16.msra.mxu1 %v4880_v38  ;;  %v4973_v38 = vld [vmem:[%s6061_s7 + $0x260] ss:$8 sps:$4 sm:$0xff]  }
 0x691   : > { %3035 = vmatprep.subr.bf16.mxu1 %v4885_v40  ;;  %v4981_v40 = vld [vmem:[%s6061_s7 + $0x284] ss:$8 sps:$4 sm:$0xff]  }
 0x692   : > { %3430 = vmatpush1.bf16.msra.mxu0 %v4967_v34 }
 0x693   : > { %3025 = vmatmul.mubr.bf16.vlgmr.msra.gmra.mrb[16].mxu1 %v2441_v47  ;;  %3431 = vmatprep.subr.bf16.mxu0 %v4972_v35 }
 0x694   : > { %3036 = vmatpush1.bf16.msra.mxu1 %v4883_v45  ;;  %3067 = vmatprep.mubr.bf16.mxu1 %v2462_v48  ;;  %v4083_v45 = vld [vmem:[%s6060_s6 + $0x1] ss:$0 sm:$0xff] }
 0x695   : > { %3037 = vmatprep.subr.bf16.mxu1 %v4888_v51 }
 0x696   : > { %3432 = vmatpush1.bf16.msra.mxu0 %v4970_v36 }
 0x697   : > { %3433 = vmatprep.subr.bf16.mxu0 %v4975_v37 }
 0x698   : > { %3038 = vmatpush1.bf16.msra.mxu1 %v4886_v49 }
 0x699   : > { %3039 = vmatprep.subr.bf16.mxu1 %v4891_v50 }
 0x69a   : > { %3434 = vmatpush1.bf16.msra.mxu0 %v4973_v38 }
 0x69b   : > { %3435 = vmatprep.subr.bf16.mxu0 %v4978_v56 }
 0x69c   : > { %3040 = vmatpush1.bf16.msra.mxu1 %v4889_v53 }
 0x69d   : > { %3041 = vmatprep.subr.bf16.mxu1 %v4894_v54 }
 0x69e   : > { %3436 = vmatpush1.bf16.msra.mxu0 %v4976_v39 }
 0x69f   : > { %3446 = vmatprep.subr.bf16.mxu0 %v4981_v40 }
 0x6a0   : > { %3042 = vmatpush1.bf16.msra.mxu1 %v4892_v44 }
 0x6a1   : > { %3043 = vmatprep.subr.bf16.mxu1 %v4897_v57 }
 0x6a4   : > { %3044 = vmatpush1.bf16.msra.mxu1 %v4895_v58 }
 0x6a5   : > { %3045 = vmatprep.subr.bf16.mxu1 %v4900_v59 }
 0x6a8   : > { %3046 = vmatpush1.bf16.msra.mxu1 %v4898_v60 }
 0x6a9   : > { %3047 = vmatprep.subr.bf16.mxu1 %v4903_v61 }
 0x6ac   : > { %3048 = vmatpush1.bf16.msra.mxu1 %v4901_v62 }
 0x6ad   : > { %3049 = vmatprep.subr.bf16.mxu1 %v4906_v63 }
 0x6b0   : > { %3050 = vmatpush1.bf16.msra.mxu1 %v4904_v0 }
 0x6b1   : > { %3051 = vmatprep.subr.bf16.mxu1 %v4909_v3 }
 0x6b4   : > { %3052 = vmatpush1.bf16.msra.mxu1 %v4907_v4 }
 0x6b5   : > { %3053 = vmatprep.subr.bf16.mxu1 %v4912_v7  ;;  %v4979_v7 = vld [vmem:[%s6061_s7 + $0x280] ss:$8 sps:$4 sm:$0xff]  }
 0x6b8   : > { %3054 = vmatpush1.bf16.msra.mxu1 %v4910_v8 }
 0x6b9   : > { %3055 = vmatprep.subr.bf16.mxu1 %v4915_v9  ;;  %v4984_v9 = vld [vmem:[%s6061_s7 + $0x294] ss:$8 sps:$4 sm:$0xff]  }
 0x6bc   : > { %3056 = vmatpush1.bf16.msra.mxu1 %v4913_v10  ;;  %v4985_v10 = vld [vmem:[%s6061_s7 + $0x2a0] ss:$8 sps:$4 sm:$0xff]  }
 0x6bd   : > { %3057 = vmatprep.subr.bf16.mxu1 %v4918_v11  ;;  %v4990_v11 = vld [vmem:[%s6061_s7 + $0x2b4] ss:$8 sps:$4 sm:$0xff]  }
 0x6c0   : > { %3058 = vmatpush1.bf16.msra.mxu1 %v4916_v12  ;;  %v4993_v12 = vld [vmem:[%s6061_s7 + $0x2c4] ss:$8 sps:$4 sm:$0xff]  }
 0x6c1   : > { %3059 = vmatprep.subr.bf16.mxu1 %v4921_v55  ;;  %v4991_v55 = vld [vmem:[%s6061_s7 + $0x2c0] ss:$8 sps:$4 sm:$0xff]  }
 0x6c4   : > { %3060 = vmatpush1.bf16.msra.mxu1 %v4919_v13  ;;  %v4996_v13 = vld [vmem:[%s6061_s7 + $0x2d4] ss:$8 sps:$4 sm:$0xff]  }
 0x6c5   : > { %3061 = vmatprep.subr.bf16.mxu1 %v4924_v14  ;;  %v4994_v14 = vld [vmem:[%s6061_s7 + $0x2d0] ss:$8 sps:$4 sm:$0xff]  }
 0x6c8   : > { %3062 = vmatpush1.bf16.msra.mxu1 %v4922_v15  ;;  %v4999_v15 = vld [vmem:[%s6061_s7 + $0x2e4] ss:$8 sps:$4 sm:$0xff]  }
 0x6c9   : > { %3063 = vmatprep.subr.bf16.mxu1 %v4927_v16  ;;  %v4997_v16 = vld [vmem:[%s6061_s7 + $0x2e0] ss:$8 sps:$4 sm:$0xff]  }
 0x6cc   : > { %3064 = vmatpush1.bf16.msra.mxu1 %v4925_v19  ;;  %v5000_v19 = vld [vmem:[%s6061_s7 + $0x2f0] ss:$8 sps:$4 sm:$0xff]  }
 0x6cd   : > { %3065 = vmatprep.subr.bf16.mxu1 %v4930_v2  ;;  %v5003_v2 = vld [vmem:[%s6063_s9 + $0x40] sm:$0xff]  }
 0x6d0   : > { %3066 = vmatpush1.bf16.msra.mxu1 %v4928_v21  ;;  %v5004_v21 = vld [vmem:[%s6063_s9 + $0x48] sm:$0xff]  }
 0x6d3   : > { %3068 = vmatmul.mubr.bf16.vlgmr.msra.gmra.mrb[16].mxu1 %v2455_v1  ;;  %v5007_v1 = vld [vmem:[%s6063_s9 + $0x60] sm:$0xff]  }
 0x6e6   : > { %v2313_v24 = vpop.f32.mrb[12].mxu1 }
 0x6e7   : > { %v2314_v25 = vadd.f32 %v3977_v52, %v2313_v24  ;;  %v4333_v26 = vpop.f32.mrb[13].mxu1  ;;  %v5008_v52 = vld [vmem:[%s6063_s9 + $0x68] sm:$0xff]   ;;  %v5009_v24 = vld [vmem:[%s6063_s9 + $0x70] sm:$0xff]  }
 0x6e8   : > { %v2316_v27 = vpop.f32.mrb[14].mxu1 }
 0x6e9   : > { %2319 = vst [vmem:[%s5836_s17] sm:$0xff] %v2314_v25  ;;  %v4334_v28 = vpop.f32.mrb[15].mxu1  ;;  %v5010_v25 = vld [vmem:[%s6063_s9 + $0x78] sm:$0xff]  }
 0x6ea   : > { %v4181_v28 = vld [vmem:[%s6062_s8 + $0x1] ss:$0 sm:$0xff] }
 0x7a6   : > { %v3069_v42 = vpop.f32.mrb[16].mxu1 }
 0x7a7   : > { %v3071_v43 = vpop.f32.mrb[17].mxu1 }
 0x7a8   : > { %v3078_v46 = vmax.f32 %v3069_v42, %v3071_v43  ;;  %v3073_v47 = vpop.f32.mrb[18].mxu1 }
 0x7a9   : > { %v3075_v51 = vpop.f32.mrb[19].mxu1 }
 0x7aa   : > { %v3088_v48 = vadd.f32 %v4083_v45, %v3078_v46  ;;  %v3079_v49 = vmax.f32 %v3073_v47, %v3075_v51 }
 0x7ac   : > { %v3090_v50 = vmax.f32 %v3088_v48, 0.0  ;;  %v3089_v53 = vadd.f32 %v4083_v45, %v3079_v49 }
 0x7ae   : > { %v3091_v54 = vmax.f32 %v3089_v53, 0.0  ;;  %v3094_v44 = vrot.slane %v3090_v50, 6 }
 0x7b0   : > { %v3095_v57 = vrot.slane %v3091_v54, 6  ;;  %v3099_v59 = vsel %vm697_vm2, %v3094_v44, 0.0 }
 0x7b2   : > { %v3096_v58 = vsel %vm1804_vm6, %v3094_v44, %v3095_v57 }
 0x7b3   : > { %v3100_v60 = vsel %vm700_vm1, %v3096_v58, 0.0 }
 0x7b4   : > { %v3101_v61 = vpack.c.bf16 %v3100_v60, %v3099_v59 }
 0x7b6   : > { %v3105_v62 = vshll.u32 %v3101_v61, 16  ;;  %v3103_v63 = vshrl.u32 %v3101_v61, 16  ;;  %v3110_v8 = vrot.slane %v3101_v61, 1 }
 0x7b8   : > { %v3107_v0 = vrot.slane %v3105_v62, 1  ;;  %v3161_v20 = vrot.slane %v3110_v8, 1 }
 0x7ba   : > { %v3108_v3 = vor.u32 %v3107_v0, %v3103_v63 }
 0x7bc   : > { %v3160_v4 = vrot.slane %v3108_v3, 1 }
 0x7be   : > { %3437 = vmatprep.mubr.bf16.mxu0 %v3160_v4 }
 0x7bf   : > { %3438 = vmatmul.mubr.bf16.vlgmr.msra.gmra.mrb[12].mxu0 %v3110_v8 }
 0x7c0   : > { %3447 = vmatpush1.bf16.msra.mxu0 %v4979_v7  ;;  %3478 = vmatprep.mubr.bf16.mxu0 %v5226_v17  ;;  %v4988_v17 = vld [vmem:[%s6061_s7 + $0x2b0] ss:$8 sps:$4 sm:$0xff]  }
 0x7c1   : > { %3448 = vmatprep.subr.bf16.mxu0 %v4984_v9 }
 0x7c4   : > { %3449 = vmatpush1.bf16.msra.mxu0 %v4982_v5 }
 0x7c5   : > { %3450 = vmatprep.subr.bf16.mxu0 %v4987_v6 }
 0x7c8   : > { %3451 = vmatpush1.bf16.msra.mxu0 %v4985_v10 }
 0x7c9   : > { %3452 = vmatprep.subr.bf16.mxu0 %v4990_v11 }
 0x7cc   : > { %3453 = vmatpush1.bf16.msra.mxu0 %v4988_v17 }
 0x7cd   : > { %3454 = vmatprep.subr.bf16.mxu0 %v4993_v12 }
 0x7d0   : > { %3455 = vmatpush1.bf16.msra.mxu0 %v4991_v55 }
 0x7d1   : > { %3456 = vmatprep.subr.bf16.mxu0 %v4996_v13 }
 0x7d4   : > { %3457 = vmatpush1.bf16.msra.mxu0 %v4994_v14 }
 0x7d5   : > { %3458 = vmatprep.subr.bf16.mxu0 %v4999_v15 }
 0x7d8   : > { %3459 = vmatpush1.bf16.msra.mxu0 %v4997_v16 }
 0x7d9   : > { %3460 = vmatprep.subr.bf16.mxu0 %v5002_v18 }
 0x7dc   : > { %3461 = vmatpush1.bf16.msra.mxu0 %v5000_v19 }
 0x7dd   : > { %4335 = vmatprep.subr.bf16.mxu0 %v5229_v41 }
 0x7df   : > { %3479 = vmatmul.mubr.bf16.vlgmr.msra.gmra.mrb[12].mxu0 %v3161_v20 }
 0x7e0   : > { %4336 = vmatpush3.bf16.msra.mxu0 %v5003_v2  ;;  %4351 = vmatprep.mubr.msk.bf16.mxu0 %vm5230_vm7, %v5229_v41 }
 0x7e1   : > { %4337 = vmatprep.subr.bf16.mxu0 %v5229_v41 }
 0x7e4   : > { %4338 = vmatpush3.bf16.msra.mxu0 %v5004_v21 }
 0x7e5   : > { %4339 = vmatprep.subr.bf16.mxu0 %v5229_v41 }
 0x7e8   : > { %4340 = vmatpush3.bf16.msra.mxu0 %v5005_v22 }
 0x7e9   : > { %4341 = vmatprep.subr.bf16.mxu0 %v5229_v41 }
 0x7ec   : > { %4342 = vmatpush3.bf16.msra.mxu0 %v5006_v23 }
 0x7ed   : > { %4343 = vmatprep.subr.bf16.mxu0 %v5229_v41 }
 0x7f0   : > { %4344 = vmatpush3.bf16.msra.mxu0 %v5007_v1 }
 0x7f1   : > { %4345 = vmatprep.subr.bf16.mxu0 %v5229_v41 }
 0x7f4   : > { %4346 = vmatpush3.bf16.msra.mxu0 %v5008_v52 }
 0x7f5   : > { %4347 = vmatprep.subr.bf16.mxu0 %v5229_v41 }
 0x7f8   : > { %4348 = vmatpush3.bf16.msra.mxu0 %v5009_v24 }
 0x7f9   : > { %4349 = vmatprep.subr.bf16.mxu0 %v5229_v41 }
 0x7fc   : > { %4350 = vmatpush3.bf16.msra.mxu0 %v5010_v25 }
 0x8b2   : > { %v3480_v26 = vpop.f32.mrb[12].mxu0 }
 0x8b3   : > { %v3482_v27 = vpop.f32.mrb[13].mxu0 }
 0x8b4   : > { %v3487_v29 = vmax.f32 %v3480_v26, %v3482_v27  ;;  %v3484_v30 = vpop.f32.mrb[14].mxu0 }
 0x8b5   : > { %v3485_v31 = vpop.f32.mrb[15].mxu0 }
 0x8b6   : > { %v3496_v32 = vadd.f32 %v4181_v28, %v3487_v29 }
 0x8b8   : > { %v3497_v33 = vmax.f32 %v3496_v32, 0.0 }
 0x8ba   : > { %v3498_v34 = vpack.c.bf16 %v3497_v33, %v3497_v33 }
 0x8bc   : > { %4352 = vmatmul.mubr.bf16.vlgmr.msra.gmra.mrb[16].mxu0 %v3498_v34 }
 0x8bd   : > { %5112 = shalt.err (!%p5109_p6)
}
 0x8be   : > { %s5113_s17 = scalar_lea.hbm %s5975_s16, 128  ;;  %s5117_s19 = scalar_lea.hbm %s6099_s15, 256 }
 0x8bf   : > { %p5114_p7 = scmp.ne.s32.totalorder %s5975_s16, %s5113_s17  ;;  %p5118_p4 = scmp.lt.u32.totalorder %s5975_s16, %s6099_s15 }
 0x8c0   : > { %p5119_p8 = scmp.lt.u32.totalorder %s5117_s19, %s5113_s17  ;;  %p5121_p13 = scmp.lt.u32.totalorder %s5113_s17, %s5975_s16 }
 0x8c1   : > { %p5115_p9 = pnand %p5114_p7, %p6100_p10 }
 0x8c2   : > { %p5120_p1 = por %p5119_p8, %p5118_p4 }
 0x8c3   : > { %p5116_p12 = pneg %p5115_p9 }
 0x8c4   : > { %p5122_p11 = por %p5121_p13, %p5120_p1 }
 0x8c6   : > { %p5123_p0 = pnand %p5122_p11, %p5116_p12 }
 0x8c8   : > { %5126 = shalt.err (!%p5123_p0)
}
 0x8c9   : > { %4439 = dma.vmem_to_hbm [thread:$0]  (%p6100_p10), %s3634_s30, 128, %s5975_s16, %s3614_s27   ;;  %v4199_v41 = vld [vmem:[%s6064_s10 + $0x1] ss:$0 sm:$0xff] }
 0x8ca   : > { %s487_s12 = scalar_lea.vmem [#allocation9], %s3799_s3  ;;  %s6101_s11 = sld [smem:[#allocation24_spill]] }
 0x8cb   : > { %s3647_s21 = sshll.u32 %s487_s12, 4  ;;  %s3619_s16 = scalar_lea.sflag [#allocation10], %s5828_s20  ;;  %s6008_s21 = int_to_ptr.vmem [resolvable:$true] %s3647_s21 }
 0x8cc   : > { %s5127_s3 = scalar_lea.vmem %s6008_s21, 128  ;;  %s5232_s24 = smov [#allocation9]  }
 0x8cd   : > { %p5128_p2 = scmp.ne.s32.totalorder %s6008_s21, %s5127_s3  ;;  %s5131_s30 = sshll.u32 %s5232_s24, 4  ;;  %s5132_s30 = int_to_ptr.vmem [resolvable:$false] %s5131_s30 }
 0x8ce   : > { %s5133_s27 = scalar_lea.vmem %s5132_s30, 256  ;;  %p5134_p6 = scmp.lt.s32.totalorder %s6008_s21, %s5132_s30 }
 0x8cf   : > { %p5129_p3 = pnand %p5128_p2, %p6100_p10  ;;  %p5135_p7 = scmp.lt.s32.totalorder %s5133_s27, %s5127_s3 }
 0x8d0   : > { %s6006_s28 = scalar_lea.hbm %s6101_s11, %s4210_s26 }
 0x8d1   : > { %p5130_p5 = pneg %p5129_p3  ;;  %p5136_p9 = por %p5135_p7, %p5134_p6 }
 0x8d3   : > { %p5137_p12 = pnand %p5136_p9, %p5130_p5 }
 0x98f   : > { %v3606_v35 = vpop.f32.mrb[16].mxu0 }
 0x990   : > { %v3607_v36 = vadd.f32 %v4199_v41, %v3606_v35  ;;  %v4353_v37 = vpop.f32.mrb[17].mxu0 }
 0x991   : > { %v3609_v38 = vpop.f32.mrb[18].mxu0 }
 0x992   : > { %3612 = vst [vmem:[%s487_s12] sm:$0xff] %v3607_v36  ;;  %v4354_v56 = vpop.f32.mrb[19].mxu0 }
 0x993   : > { %5140 = shalt.err (!%p5137_p12)
}
 0x994   : > { %s5141_s20 = scalar_lea.hbm %s6006_s28, 128  ;;  %s5145_s18 = scalar_lea.hbm %s6101_s11, 256 }
 0x995   : > { %p5142_p4 = scmp.ne.s32.totalorder %s6006_s28, %s5141_s20  ;;  %p5146_p13 = scmp.lt.u32.totalorder %s6006_s28, %s6101_s11 }
 0x996   : > { %p5147_p11 = scmp.lt.u32.totalorder %s5145_s18, %s5141_s20  ;;  %p5149_p2 = scmp.lt.u32.totalorder %s5141_s20, %s6006_s28 }
 0x997   : > { %p5143_p8 = pnand %p5142_p4, %p6100_p10 }
 0x998   : > { %p5148_p0 = por %p5147_p11, %p5146_p13 }
 0x999   : > { %p5144_p1 = pneg %p5143_p8 }
 0x99a   : > { %p5150_p3 = por %p5149_p2, %p5148_p0 }
 0x99c   : > { %p5151_p5 = pnand %p5150_p3, %p5144_p1 }
 0x99e   : > { %5154 = shalt.err (!%p5151_p5)
}
 0x99f   : > { %4440 = dma.vmem_to_hbm [thread:$0]  (%p6100_p10), %s6008_s21, 128, %s6006_s28, %s3619_s16  }
 0x9a0 PF: > { %s6102_s25 = sld [smem:[#allocation18_spill]]  ;;  %s6103_s12 = sld [smem:[#allocation15_spill]] }
 0x9a1   : > { %s6104_s14 = sld [smem:[#allocation20_spill]] }
 0x9a6   : > { %p4466_p6 = scmp.ge.s32.totalorder %s6102_s25, 2  ;;  %s3659_s17 = sand.u32 1, %s6103_s12  }
 0x9a7   : > { %p6105_p7 = scmp.ne.s32.totalorder %s6104_s14, 0  ;;  %s3660_s3 = scalar_lea.sflag [#allocation4], %s3659_s17 }
 0x9a9   : > { %p4454_p9 = pnand %p4466_p6, %p6105_p7 }
 0x9ab   : > { %5188 = dma.done.wait (!%p4454_p9), %s3660_s3, 128  }
 0x9ac   : > { %5190 = vsyncadd (!%p4454_p9), %s3660_s3, 4294967168  ;;  %s3669_s24 = scalar_lea.sflag [#allocation10], %s3659_s17 }
 0x9ad   : > { %5192 = dma.done.wait (!%p4454_p9), %s3669_s24, 128  }
 0x9ae   : > { %5194 = vsyncadd (!%p4454_p9), %s3669_s24, 4294967168  ;;  %s31_s26 = sadd.s32 1, %s6102_s25   ;;  %s6106_s13 = sld [smem:[#allocation16_spill]] }
 0x9af   : > { %p28_p12 = scmp.ge.s32.totalorder %s31_s26, 4   ;;  %s6107_s23 = sld [smem:[#allocation21_spill]] }
 0x9b0   : > { %s6108_s24 = sld [smem:[#allocation17_spill]]  ;;  %s6109_s25 = sld [smem:[#allocation19_spill]] }
 0x9b1   : > { %s6110_s21 = smov %s5201_s22  ;;  %30 = sbr.rel (!%p28_p12) target bundleno = 12 (0xc), region = 135 }
 0x9b4   : > { %s6111_s22 = smov %s6106_s13 }
 0x9b8   :  { %3674 = vsyncpa [#allocation3], 1 }
 0x9b9   :  { %3676 = vsyncpa [#allocation3 + $0x1], 1 }
 0x9ba   :  { %3677 = vsyncpa [#allocation6], 1 }
 0x9bb   :  { %3678 = vsyncpa [#allocation4], 1 }
 0x9bc   :  { %3680 = vsyncpa [#allocation4 + $0x1], 1 }
 0x9bd   :  { %3681 = vsyncpa [#allocation10], 1 }
 0x9be   :  { %3683 = vsyncpa [#allocation10 + $0x1], 1 }

</bundles_post_ra>
